<compile_context>
chip_gen: v7x
topology: tpu7x:2x2x1
jax: 0.10.0
libtpu: 0.0.40
codegen_flags: <defaults>
</compile_context>

<pallas_src>
import math

import jax
import jax.numpy as jnp
import numpy as np
from jax.experimental import pallas as pl
from jax.experimental.pallas import tpu as pltpu

# ---- model config (small, consistent with the module) -----------------------
B = 2           # batch
S = 8           # sequence length
H = 32          # hidden_dim
N_HEADS = 4
HEAD_DIM = H // N_HEADS
PFF = 64        # pff_dim
EPS = 1e-6
MASK_FILL = -0.0001     # torch: scores.masked_fill(mask == 0, -0.0001)
NEG_BIG = -1e30         # cross-batch kill value: exp(NEG_BIG - m) == 0 in f32

T = B * S               # flattened token count


def _layer_norm(v, a, b):
    # torch custom LayerNorm: mean over last dim, UNBIASED std, a*(x-m)/(std+eps)+b
    mean = jnp.mean(v, axis=-1, keepdims=True)
    d = v - mean
    var = jnp.sum(d * d, axis=-1, keepdims=True) / (v.shape[-1] - 1)
    # Review item 7 (EUP reciprocal) intentionally not applied: the plain divide
    # keeps the 1e-4 check against the f32 reference safe and is negligible here.
    return a * d / (jnp.sqrt(var) + EPS) + b


def encoder_kernel(x_ref, keep_ref, fill_ref,
                   ln1a_ref, ln1b_ref,
                   wqkv_ref, bqkv_ref, wo_ref, bo_ref,
                   ln2a_ref, ln2b_ref,
                   w1_ref, b1_ref, w2_ref, b2_ref,
                   o_ref):
    inv_sqrt_dk = 1.0 / math.sqrt(HEAD_DIM)

    x = x_ref[...]                                       # (T, H)

    # ---- sublayer 0: pre-norm + multi-head self-attention + residual --------
    xn = _layer_norm(x, ln1a_ref[...], ln1b_ref[...])

    # Fused QKV projection: one MXU push of (T, H) x (H, 3H).
    qkv = jnp.dot(xn, wqkv_ref[...],
                  preferred_element_type=jnp.float32) + bqkv_ref[...]   # (T, 3H)

    # (T, H) -> (N_HEADS, T, D): heads become the leading batch dim so both
    # attention matmuls are single leading-batch-dim einsums over all
    # (batch, head) pairs at once.  Item 9 (wqkv column repacking) left as-is:
    # the three 32-lane slices below are in-vreg lane re-origins only.
    def heads(t):
        return t.reshape(T, N_HEADS, HEAD_DIM).transpose(1, 0, 2)

    qh = heads(qkv[:, 0 * H:1 * H])
    kh = heads(qkv[:, 1 * H:2 * H])
    vh = heads(qkv[:, 2 * H:3 * H])

    # Scores over ALL tokens (both batch elements): (N, T, T).  Cross-batch
    # entries are removed below with a NEG_BIG fill (softmax weight exactly 0).
    s = jnp.einsum("nqd,nkd->nqk", qh, kh,
                   preferred_element_type=jnp.float32) * inv_sqrt_dk

    # Single mask pass (review item 8): keep/fill precomputed in the wrapper.
    #   kept:        s*1 + 0        = s
    #   user-masked: s*0 + (-1e-4)  = -1e-4   (module's masked_fill value)
    #   cross-batch: s*0 + (-1e30)  -> softmax weight exactly 0
    s = s * keep_ref[...] + fill_ref[...]                # (T,T) broadcasts over N

    m = jnp.max(s, axis=-1, keepdims=True)
    e = jnp.exp(s - m)
    l = jnp.sum(e, axis=-1, keepdims=True)
    # approx=True (review item 6) would put this on the otherwise-idle EUP slot,
    # but its relative error sits at the 1e-4 atol floor after the residual/FFN
    # path, so it stays exact to keep the correctness gate safe.
    p = e * pl.reciprocal(l, approx=False)
    o = jnp.einsum("nqk,nkd->nqd", p, vh,
                   preferred_element_type=jnp.float32)   # (N, T, D)

    attn = o.transpose(1, 0, 2).reshape(T, H)            # head-major columns
    attn = jnp.dot(attn, wo_ref[...],
                   preferred_element_type=jnp.float32) + bo_ref[...]
    # TODO(synk): nn.Dropout layers are identity here (inference / eval mode).
    x1 = x + attn

    # ---- sublayer 1: pre-norm + position-wise FFN + residual ----------------
    xn2 = _layer_norm(x1, ln2a_ref[...], ln2b_ref[...])
    h1 = jnp.dot(xn2, w1_ref[...],
                 preferred_element_type=jnp.float32) + b1_ref[...]
    h1 = jnp.maximum(h1, 0.0)
    ff = jnp.dot(h1, w2_ref[...],
                 preferred_element_type=jnp.float32) + b2_ref[...]
    o_ref[...] = x1 + ff


def encoder_layer(x, mask, params):
    """x: (B, S, H) f32, mask: (B, S, S) f32 (1 = keep, 0 = masked)."""
    # -------- wrapper-side packing (free layout plumbing) --------------------
    wqkv_t = jnp.concatenate(
        [params["wq"].T, params["wk"].T, params["wv"].T], axis=1)  # (H, 3H)
    bqkv = jnp.concatenate(
        [params["bq"], params["bk"], params["bv"]], axis=1)        # (1, 3H)

    # Flattened-token mask tensors: keep (1.0 = real score) and fill (value
    # added where keep == 0).  Cross-batch positions get NEG_BIG, user-masked
    # positions get the module's -1e-4, kept positions get 0.
    bid = np.arange(T) // S
    same = bid[:, None] == bid[None, :]                  # (T, T) static bool
    blockm = jnp.zeros((T, T), jnp.float32)
    for b in range(B):
        blockm = blockm.at[b * S:(b + 1) * S, b * S:(b + 1) * S].set(mask[b])
    keep = jnp.where(same, (blockm != 0).astype(jnp.float32), 0.0)
    fill = jnp.where(same,
                     jnp.where(blockm != 0, 0.0, jnp.float32(MASK_FILL)),
                     jnp.float32(NEG_BIG)).astype(jnp.float32)

    packed = [
        params["ln1_a"], params["ln1_b"],
        wqkv_t, bqkv, params["wo"].T, params["bo"],
        params["ln2_a"], params["ln2_b"],
        params["w1"].T, params["b1"], params["w2"].T, params["b2"],
    ]

    def full_spec(p):
        nd = p.ndim
        return pl.BlockSpec(p.shape, lambda i, _nd=nd: (0,) * _nd)

    x2d = x.reshape(T, H)
    inputs = [x2d, keep, fill] + packed
    in_specs = [full_spec(p) for p in inputs]
    out_spec = pl.BlockSpec((T, H), lambda i: (0, 0))

    # Single grid step for every chip generation (review item 3): splitting the
    # batch across steps / TensorCores duplicates the weight DMA and adds
    # per-step overhead for negligible compute savings at this problem size.
    out2d = pl.pallas_call(
        encoder_kernel,
        out_shape=jax.ShapeDtypeStruct((T, H), jnp.float32),
        grid=(1,),
        in_specs=in_specs,
        out_specs=out_spec,
        compiler_params=pltpu.CompilerParams(
            dimension_semantics=("arbitrary",)),
    )(*inputs)
    return out2d.reshape(B, S, H)


# ---------------- pure-JAX reference (same math, vectorized) -----------------
def ref_encoder_layer(x, mask, params):
    def ln(v, a, b):
        mean = jnp.mean(v, axis=-1, keepdims=True)
        d = v - mean
        var = jnp.sum(d * d, axis=-1, keepdims=True) / (v.shape[-1] - 1)
        return a * d / (jnp.sqrt(var) + EPS) + b

    xn = ln(x, params["ln1_a"], params["ln1_b"])
    q = xn @ params["wq"].T + params["bq"]
    k = xn @ params["wk"].T + params["bk"]
    v = xn @ params["wv"].T + params["bv"]

    def split(t):  # (B,S,H) -> (B,N,S,D)
        return t.reshape(B, S, N_HEADS, HEAD_DIM).transpose(0, 2, 1, 3)

    q, k, v = split(q), split(k), split(v)
    scores = jnp.einsum("bnqd,bnkd->bnqk", q, k) / math.sqrt(HEAD_DIM)
    scores = jnp.where(mask[:, None, :, :] == 0, MASK_FILL, scores)
    p = jax.nn.softmax(scores, axis=-1)
    attn = jnp.einsum("bnqk,bnkd->bnqd", p, v)
    attn = attn.transpose(0, 2, 1, 3).reshape(B, S, H)
    attn = attn @ params["wo"].T + params["bo"]
    x1 = x + attn

    xn2 = ln(x1, params["ln2_a"], params["ln2_b"])
    h1 = jnp.maximum(xn2 @ params["w1"].T + params["b1"], 0.0)
    ff = h1 @ params["w2"].T + params["b2"]
    return x1 + ff


def init_params(key):
    ks = jax.random.split(key, 12)
    scale_h = 1.0 / math.sqrt(H)
    scale_p = 1.0 / math.sqrt(PFF)
    return {
        "ln1_a": jnp.ones((1, H), jnp.float32),
        "ln1_b": jnp.zeros((1, H), jnp.float32),
        "ln2_a": jnp.ones((1, H), jnp.float32),
        "ln2_b": jnp.zeros((1, H), jnp.float32),
        "wq": jax.random.normal(ks[0], (H, H), jnp.float32) * scale_h,
        "bq": jax.random.normal(ks[1], (1, H), jnp.float32) * 0.01,
        "wk": jax.random.normal(ks[2], (H, H), jnp.float32) * scale_h,
        "bk": jax.random.normal(ks[3], (1, H), jnp.float32) * 0.01,
        "wv": jax.random.normal(ks[4], (H, H), jnp.float32) * scale_h,
        "bv": jax.random.normal(ks[5], (1, H), jnp.float32) * 0.01,
        "wo": jax.random.normal(ks[6], (H, H), jnp.float32) * scale_h,
        "bo": jax.random.normal(ks[7], (1, H), jnp.float32) * 0.01,
        "w1": jax.random.normal(ks[8], (PFF, H), jnp.float32) * scale_h,
        "b1": jax.random.normal(ks[9], (1, PFF), jnp.float32) * 0.01,
        "w2": jax.random.normal(ks[10], (H, PFF), jnp.float32) * scale_p,
        "b2": jax.random.normal(ks[11], (1, H), jnp.float32) * 0.01,
    }


if __name__ == "__main__":
    key = jax.random.PRNGKey(0)
    kx, kmask, kparam = jax.random.split(key, 3)

    x = jax.random.normal(kx, (B, S, H), jnp.float32)
    mask = (jax.random.uniform(kmask, (B, S, S)) > 0.3).astype(jnp.float32)
    params = init_params(kparam)

    out = jax.block_until_ready(encoder_layer(x, mask, params))

    ref = ref_encoder_layer(x, mask, params)
    np.testing.assert_allclose(np.asarray(out), np.asarray(ref),
                               rtol=1e-4, atol=1e-4)

    print("KERNEL_OK")
</pallas_src>

<mosaic_0001>
module attributes {stable_mosaic.version = 11 : i64} {
  func.func @encoder_kernel(%arg0: i32, %arg1: memref<16x32xf32, #tpu.memory_space<vmem>>, %arg2: memref<16x16xf32, #tpu.memory_space<vmem>>, %arg3: memref<16x16xf32, #tpu.memory_space<vmem>>, %arg4: memref<1x32xf32, #tpu.memory_space<vmem>>, %arg5: memref<1x32xf32, #tpu.memory_space<vmem>>, %arg6: memref<32x96xf32, #tpu.memory_space<vmem>>, %arg7: memref<1x96xf32, #tpu.memory_space<vmem>>, %arg8: memref<32x32xf32, #tpu.memory_space<vmem>>, %arg9: memref<1x32xf32, #tpu.memory_space<vmem>>, %arg10: memref<1x32xf32, #tpu.memory_space<vmem>>, %arg11: memref<1x32xf32, #tpu.memory_space<vmem>>, %arg12: memref<32x64xf32, #tpu.memory_space<vmem>>, %arg13: memref<1x64xf32, #tpu.memory_space<vmem>>, %arg14: memref<64x32xf32, #tpu.memory_space<vmem>>, %arg15: memref<1x32xf32, #tpu.memory_space<vmem>>, %arg16: memref<16x32xf32, #tpu.memory_space<vmem>>) attributes {dimension_semantics = [#tpu.dimension_semantics<arbitrary>], iteration_bounds = array<i64: 1>, scalar_prefetch = 0 : i64, scratch_operands = 0 : i64, tpu.core_type = #tpu.core_type<tc>, window_params = [{pipeline_mode = #tpu.pipeline_mode<synchronous>, transform_indices = @transform_0, window_bounds = array<i64: 16, 32>}, {pipeline_mode = #tpu.pipeline_mode<synchronous>, transform_indices = @transform_1, window_bounds = array<i64: 16, 16>}, {pipeline_mode = #tpu.pipeline_mode<synchronous>, transform_indices = @transform_2, window_bounds = array<i64: 16, 16>}, {pipeline_mode = #tpu.pipeline_mode<synchronous>, transform_indices = @transform_3, window_bounds = array<i64: 1, 32>}, {pipeline_mode = #tpu.pipeline_mode<synchronous>, transform_indices = @transform_4, window_bounds = array<i64: 1, 32>}, {pipeline_mode = #tpu.pipeline_mode<synchronous>, transform_indices = @transform_5, window_bounds = array<i64: 32, 96>}, {pipeline_mode = #tpu.pipeline_mode<synchronous>, transform_indices = @transform_6, window_bounds = array<i64: 1, 96>}, {pipeline_mode = #tpu.pipeline_mode<synchronous>, transform_indices = @transform_7, window_bounds = array<i64: 32, 32>}, {pipeline_mode = #tpu.pipeline_mode<synchronous>, transform_indices = @transform_8, window_bounds = array<i64: 1, 32>}, {pipeline_mode = #tpu.pipeline_mode<synchronous>, transform_indices = @transform_9, window_bounds = array<i64: 1, 32>}, {pipeline_mode = #tpu.pipeline_mode<synchronous>, transform_indices = @transform_10, window_bounds = array<i64: 1, 32>}, {pipeline_mode = #tpu.pipeline_mode<synchronous>, transform_indices = @transform_11, window_bounds = array<i64: 32, 64>}, {pipeline_mode = #tpu.pipeline_mode<synchronous>, transform_indices = @transform_12, window_bounds = array<i64: 1, 64>}, {pipeline_mode = #tpu.pipeline_mode<synchronous>, transform_indices = @transform_13, window_bounds = array<i64: 64, 32>}, {pipeline_mode = #tpu.pipeline_mode<synchronous>, transform_indices = @transform_14, window_bounds = array<i64: 1, 32>}, {pipeline_mode = #tpu.pipeline_mode<synchronous>, transform_indices = @transform_15, window_bounds = array<i64: 16, 32>}]} {
    %c0 = arith.constant 0 : index
    %c0_0 = arith.constant 0 : index
    %0 = vector.load %arg1[%c0, %c0_0] : memref<16x32xf32, #tpu.memory_space<vmem>>, vector<16x32xf32>
    %c0_1 = arith.constant 0 : index
    %c0_2 = arith.constant 0 : index
    %1 = vector.load %arg4[%c0_1, %c0_2] : memref<1x32xf32, #tpu.memory_space<vmem>>, vector<1x32xf32>
    %c0_3 = arith.constant 0 : index
    %c0_4 = arith.constant 0 : index
    %2 = vector.load %arg5[%c0_3, %c0_4] : memref<1x32xf32, #tpu.memory_space<vmem>>, vector<1x32xf32>
    %cst = arith.constant dense<0.000000e+00> : vector<16xf32>
    %3 = vector.multi_reduction <add>, %0, %cst [1] : vector<16x32xf32> to vector<16xf32>
    %4 = vector.shape_cast %3 : vector<16xf32> to vector<16x1xf32>
    %cst_5 = arith.constant 3.200000e+01 : f32
    %5 = vector.broadcast %cst_5 : f32 to vector<16x1xf32>
    %6 = arith.divf %4, %5 : vector<16x1xf32>
    %7 = vector.broadcast %6 : vector<16x1xf32> to vector<16x32xf32>
    %8 = arith.subf %0, %7 : vector<16x32xf32>
    %9 = arith.mulf %8, %8 : vector<16x32xf32>
    %cst_6 = arith.constant dense<0.000000e+00> : vector<16xf32>
    %10 = vector.multi_reduction <add>, %9, %cst_6 [1] : vector<16x32xf32> to vector<16xf32>
    %11 = vector.shape_cast %10 : vector<16xf32> to vector<16x1xf32>
    %cst_7 = arith.constant 3.100000e+01 : f32
    %12 = vector.broadcast %cst_7 : f32 to vector<16x1xf32>
    %13 = arith.divf %11, %12 : vector<16x1xf32>
    %14 = vector.broadcast %1 : vector<1x32xf32> to vector<16x32xf32>
    %15 = arith.mulf %14, %8 : vector<16x32xf32>
    %16 = math.sqrt %13 : vector<16x1xf32>
    %cst_8 = arith.constant 9.99999997E-7 : f32
    %17 = vector.broadcast %cst_8 : f32 to vector<16x1xf32>
    %18 = arith.addf %16, %17 : vector<16x1xf32>
    %19 = vector.broadcast %18 : vector<16x1xf32> to vector<16x32xf32>
    %20 = arith.divf %15, %19 : vector<16x32xf32>
    %21 = vector.broadcast %2 : vector<1x32xf32> to vector<16x32xf32>
    %22 = arith.addf %20, %21 : vector<16x32xf32>
    %c0_9 = arith.constant 0 : index
    %c0_10 = arith.constant 0 : index
    %23 = vector.load %arg6[%c0_9, %c0_10] : memref<32x96xf32, #tpu.memory_space<vmem>>, vector<32x96xf32>
    %cst_11 = arith.constant dense<0.000000e+00> : vector<16x96xf32>
    %24 = tpu.matmul %22, %23, %cst_11 {dimension_numbers = #tpu.dot_dimension_numbers<[1], [0], [0], [1], [0, 0, 1, 1], [], []>} : vector<16x32xf32>, vector<32x96xf32>, vector<16x96xf32> -> vector<16x96xf32>
    %c0_12 = arith.constant 0 : index
    %c0_13 = arith.constant 0 : index
    %25 = vector.load %arg7[%c0_12, %c0_13] : memref<1x96xf32, #tpu.memory_space<vmem>>, vector<1x96xf32>
    %26 = vector.broadcast %25 : vector<1x96xf32> to vector<16x96xf32>
    %27 = arith.addf %24, %26 : vector<16x96xf32>
    %28 = vector.extract_strided_slice %27 {offsets = [0, 0], sizes = [16, 32], strides = [1, 1]} : vector<16x96xf32> to vector<16x32xf32>
    %29 = vector.shape_cast %28 : vector<16x32xf32> to vector<16x4x8xf32>
    %30 = tpu.transpose %29, [1, 0, 2] : vector<16x4x8xf32> -> vector<4x16x8xf32>
    %31 = vector.extract_strided_slice %27 {offsets = [0, 32], sizes = [16, 32], strides = [1, 1]} : vector<16x96xf32> to vector<16x32xf32>
    %32 = vector.shape_cast %31 : vector<16x32xf32> to vector<16x4x8xf32>
    %33 = tpu.transpose %32, [1, 0, 2] : vector<16x4x8xf32> -> vector<4x16x8xf32>
    %34 = vector.extract_strided_slice %27 {offsets = [0, 64], sizes = [16, 32], strides = [1, 1]} : vector<16x96xf32> to vector<16x32xf32>
    %35 = vector.shape_cast %34 : vector<16x32xf32> to vector<16x4x8xf32>
    %36 = tpu.transpose %35, [1, 0, 2] : vector<16x4x8xf32> -> vector<4x16x8xf32>
    "tpu.trace_start"() <{level = 10 : i32, message = "nqd,nkd->nqk"}> : () -> ()
    %cst_14 = arith.constant dense<0.000000e+00> : vector<4x16x16xf32>
    %37 = tpu.matmul %30, %33, %cst_14 {dimension_numbers = #tpu.dot_dimension_numbers<[2], [2], [1], [1], [0, 0, 0, 1, 1, 1], [0], [0]>} : vector<4x16x8xf32>, vector<4x16x8xf32>, vector<4x16x16xf32> -> vector<4x16x16xf32>
    "tpu.trace_stop"() : () -> ()
    %cst_15 = arith.constant 0.353553385 : f32
    %38 = vector.broadcast %cst_15 : f32 to vector<4x16x16xf32>
    %39 = arith.mulf %37, %38 : vector<4x16x16xf32>
    %c0_16 = arith.constant 0 : index
    %c0_17 = arith.constant 0 : index
    %40 = vector.load %arg2[%c0_16, %c0_17] : memref<16x16xf32, #tpu.memory_space<vmem>>, vector<16x16xf32>
    %41 = vector.shape_cast %40 : vector<16x16xf32> to vector<1x16x16xf32>
    %42 = vector.broadcast %41 : vector<1x16x16xf32> to vector<4x16x16xf32>
    %43 = arith.mulf %39, %42 : vector<4x16x16xf32>
    %c0_18 = arith.constant 0 : index
    %c0_19 = arith.constant 0 : index
    %44 = vector.load %arg3[%c0_18, %c0_19] : memref<16x16xf32, #tpu.memory_space<vmem>>, vector<16x16xf32>
    %45 = vector.shape_cast %44 : vector<16x16xf32> to vector<1x16x16xf32>
    %46 = vector.broadcast %45 : vector<1x16x16xf32> to vector<4x16x16xf32>
    %47 = arith.addf %43, %46 : vector<4x16x16xf32>
    %cst_20 = arith.constant dense<0xFF800000> : vector<4x16xf32>
    %48 = vector.multi_reduction <maximumf>, %47, %cst_20 [2] : vector<4x16x16xf32> to vector<4x16xf32>
    %49 = vector.shape_cast %48 : vector<4x16xf32> to vector<4x16x1xf32>
    %50 = vector.broadcast %49 : vector<4x16x1xf32> to vector<4x16x16xf32>
    %51 = arith.subf %47, %50 : vector<4x16x16xf32>
    %52 = math.exp %51 : vector<4x16x16xf32>
    %cst_21 = arith.constant dense<0.000000e+00> : vector<4x16xf32>
    %53 = vector.multi_reduction <add>, %52, %cst_21 [2] : vector<4x16x16xf32> to vector<4x16xf32>
    %54 = vector.shape_cast %53 : vector<4x16xf32> to vector<4x16x1xf32>
    %55 = tpu.reciprocal %54 : vector<4x16x1xf32> -> vector<4x16x1xf32>
    %56 = vector.broadcast %55 : vector<4x16x1xf32> to vector<4x16x16xf32>
    %57 = arith.mulf %52, %56 : vector<4x16x16xf32>
    "tpu.trace_start"() <{level = 10 : i32, message = "nqk,nkd->nqd"}> : () -> ()
    %cst_22 = arith.constant dense<0.000000e+00> : vector<4x16x8xf32>
    %58 = tpu.matmul %57, %36, %cst_22 {dimension_numbers = #tpu.dot_dimension_numbers<[2], [1], [1], [2], [0, 0, 0, 1, 1, 2], [0], [0]>} : vector<4x16x16xf32>, vector<4x16x8xf32>, vector<4x16x8xf32> -> vector<4x16x8xf32>
    "tpu.trace_stop"() : () -> ()
    %59 = tpu.transpose %58, [1, 0, 2] : vector<4x16x8xf32> -> vector<16x4x8xf32>
    %60 = vector.shape_cast %59 : vector<16x4x8xf32> to vector<16x32xf32>
    %c0_23 = arith.constant 0 : index
    %c0_24 = arith.constant 0 : index
    %61 = vector.load %arg8[%c0_23, %c0_24] : memref<32x32xf32, #tpu.memory_space<vmem>>, vector<32x32xf32>
    %cst_25 = arith.constant dense<0.000000e+00> : vector<16x32xf32>
    %62 = tpu.matmul %60, %61, %cst_25 {dimension_numbers = #tpu.dot_dimension_numbers<[1], [0], [0], [1], [0, 0, 1, 1], [], []>} : vector<16x32xf32>, vector<32x32xf32>, vector<16x32xf32> -> vector<16x32xf32>
    %c0_26 = arith.constant 0 : index
    %c0_27 = arith.constant 0 : index
    %63 = vector.load %arg9[%c0_26, %c0_27] : memref<1x32xf32, #tpu.memory_space<vmem>>, vector<1x32xf32>
    %64 = vector.broadcast %63 : vector<1x32xf32> to vector<16x32xf32>
    %65 = arith.addf %62, %64 : vector<16x32xf32>
    %66 = arith.addf %0, %65 : vector<16x32xf32>
    %c0_28 = arith.constant 0 : index
    %c0_29 = arith.constant 0 : index
    %67 = vector.load %arg10[%c0_28, %c0_29] : memref<1x32xf32, #tpu.memory_space<vmem>>, vector<1x32xf32>
    %c0_30 = arith.constant 0 : index
    %c0_31 = arith.constant 0 : index
    %68 = vector.load %arg11[%c0_30, %c0_31] : memref<1x32xf32, #tpu.memory_space<vmem>>, vector<1x32xf32>
    %cst_32 = arith.constant dense<0.000000e+00> : vector<16xf32>
    %69 = vector.multi_reduction <add>, %66, %cst_32 [1] : vector<16x32xf32> to vector<16xf32>
    %70 = vector.shape_cast %69 : vector<16xf32> to vector<16x1xf32>
    %cst_33 = arith.constant 3.200000e+01 : f32
    %71 = vector.broadcast %cst_33 : f32 to vector<16x1xf32>
    %72 = arith.divf %70, %71 : vector<16x1xf32>
    %73 = vector.broadcast %72 : vector<16x1xf32> to vector<16x32xf32>
    %74 = arith.subf %66, %73 : vector<16x32xf32>
    %75 = arith.mulf %74, %74 : vector<16x32xf32>
    %cst_34 = arith.constant dense<0.000000e+00> : vector<16xf32>
    %76 = vector.multi_reduction <add>, %75, %cst_34 [1] : vector<16x32xf32> to vector<16xf32>
    %77 = vector.shape_cast %76 : vector<16xf32> to vector<16x1xf32>
    %cst_35 = arith.constant 3.100000e+01 : f32
    %78 = vector.broadcast %cst_35 : f32 to vector<16x1xf32>
    %79 = arith.divf %77, %78 : vector<16x1xf32>
    %80 = vector.broadcast %67 : vector<1x32xf32> to vector<16x32xf32>
    %81 = arith.mulf %80, %74 : vector<16x32xf32>
    %82 = math.sqrt %79 : vector<16x1xf32>
    %cst_36 = arith.constant 9.99999997E-7 : f32
    %83 = vector.broadcast %cst_36 : f32 to vector<16x1xf32>
    %84 = arith.addf %82, %83 : vector<16x1xf32>
    %85 = vector.broadcast %84 : vector<16x1xf32> to vector<16x32xf32>
    %86 = arith.divf %81, %85 : vector<16x32xf32>
    %87 = vector.broadcast %68 : vector<1x32xf32> to vector<16x32xf32>
    %88 = arith.addf %86, %87 : vector<16x32xf32>
    %c0_37 = arith.constant 0 : index
    %c0_38 = arith.constant 0 : index
    %89 = vector.load %arg12[%c0_37, %c0_38] : memref<32x64xf32, #tpu.memory_space<vmem>>, vector<32x64xf32>
    %cst_39 = arith.constant dense<0.000000e+00> : vector<16x64xf32>
    %90 = tpu.matmul %88, %89, %cst_39 {dimension_numbers = #tpu.dot_dimension_numbers<[1], [0], [0], [1], [0, 0, 1, 1], [], []>} : vector<16x32xf32>, vector<32x64xf32>, vector<16x64xf32> -> vector<16x64xf32>
    %c0_40 = arith.constant 0 : index
    %c0_41 = arith.constant 0 : index
    %91 = vector.load %arg13[%c0_40, %c0_41] : memref<1x64xf32, #tpu.memory_space<vmem>>, vector<1x64xf32>
    %92 = vector.broadcast %91 : vector<1x64xf32> to vector<16x64xf32>
    %93 = arith.addf %90, %92 : vector<16x64xf32>
    %cst_42 = arith.constant 0.000000e+00 : f32
    %94 = vector.broadcast %cst_42 : f32 to vector<16x64xf32>
    %95 = arith.maximumf %93, %94 : vector<16x64xf32>
    %c0_43 = arith.constant 0 : index
    %c0_44 = arith.constant 0 : index
    %96 = vector.load %arg14[%c0_43, %c0_44] : memref<64x32xf32, #tpu.memory_space<vmem>>, vector<64x32xf32>
    %cst_45 = arith.constant dense<0.000000e+00> : vector<16x32xf32>
    %97 = tpu.matmul %95, %96, %cst_45 {dimension_numbers = #tpu.dot_dimension_numbers<[1], [0], [0], [1], [0, 0, 1, 1], [], []>} : vector<16x64xf32>, vector<64x32xf32>, vector<16x32xf32> -> vector<16x32xf32>
    %c0_46 = arith.constant 0 : index
    %c0_47 = arith.constant 0 : index
    %98 = vector.load %arg15[%c0_46, %c0_47] : memref<1x32xf32, #tpu.memory_space<vmem>>, vector<1x32xf32>
    %99 = vector.broadcast %98 : vector<1x32xf32> to vector<16x32xf32>
    %100 = arith.addf %97, %99 : vector<16x32xf32>
    %101 = arith.addf %66, %100 : vector<16x32xf32>
    %c0_48 = arith.constant 0 : index
    %c0_49 = arith.constant 0 : index
    %102 = vector.load %arg16[%c0_48, %c0_49] : memref<16x32xf32, #tpu.memory_space<vmem>>, vector<16x32xf32>
    tpu.vector_store %arg16[%c0_48, %c0_49], %101 {strides = array<i32>} : memref<16x32xf32, #tpu.memory_space<vmem>>, vector<16x32xf32>,
    return
  }
  func.func @transform_0(%arg0: i32) -> (i32, i32) {
    %c0_i32 = arith.constant 0 : i32
    %c0_i32_0 = arith.constant 0 : i32
    %c0_i32_1 = arith.constant 0 : i32
    return %c0_i32, %c0_i32_0 : i32, i32
  }
  func.func @transform_1(%arg0: i32) -> (i32, i32) {
    %c0_i32 = arith.constant 0 : i32
    %c0_i32_0 = arith.constant 0 : i32
    %c0_i32_1 = arith.constant 0 : i32
    return %c0_i32, %c0_i32_0 : i32, i32
  }
  func.func @transform_2(%arg0: i32) -> (i32, i32) {
    %c0_i32 = arith.constant 0 : i32
    %c0_i32_0 = arith.constant 0 : i32
    %c0_i32_1 = arith.constant 0 : i32
    return %c0_i32, %c0_i32_0 : i32, i32
  }
  func.func @transform_3(%arg0: i32) -> (i32, i32) {
    %c0_i32 = arith.constant 0 : i32
    %c0_i32_0 = arith.constant 0 : i32
    %c0_i32_1 = arith.constant 0 : i32
    return %c0_i32, %c0_i32_0 : i32, i32
  }
  func.func @transform_4(%arg0: i32) -> (i32, i32) {
    %c0_i32 = arith.constant 0 : i32
    %c0_i32_0 = arith.constant 0 : i32
    %c0_i32_1 = arith.constant 0 : i32
    return %c0_i32, %c0_i32_0 : i32, i32
  }
  func.func @transform_5(%arg0: i32) -> (i32, i32) {
    %c0_i32 = arith.constant 0 : i32
    %c0_i32_0 = arith.constant 0 : i32
    %c0_i32_1 = arith.constant 0 : i32
    return %c0_i32, %c0_i32_0 : i32, i32
  }
  func.func @transform_6(%arg0: i32) -> (i32, i32) {
    %c0_i32 = arith.constant 0 : i32
    %c0_i32_0 = arith.constant 0 : i32
    %c0_i32_1 = arith.constant 0 : i32
    return %c0_i32, %c0_i32_0 : i32, i32
  }
  func.func @transform_7(%arg0: i32) -> (i32, i32) {
    %c0_i32 = arith.constant 0 : i32
    %c0_i32_0 = arith.constant 0 : i32
    %c0_i32_1 = arith.constant 0 : i32
    return %c0_i32, %c0_i32_0 : i32, i32
  }
  func.func @transform_8(%arg0: i32) -> (i32, i32) {
    %c0_i32 = arith.constant 0 : i32
    %c0_i32_0 = arith.constant 0 : i32
    %c0_i32_1 = arith.constant 0 : i32
    return %c0_i32, %c0_i32_0 : i32, i32
  }
  func.func @transform_9(%arg0: i32) -> (i32, i32) {
    %c0_i32 = arith.constant 0 : i32
    %c0_i32_0 = arith.constant 0 : i32
    %c0_i32_1 = arith.constant 0 : i32
    return %c0_i32, %c0_i32_0 : i32, i32
  }
  func.func @transform_10(%arg0: i32) -> (i32, i32) {
    %c0_i32 = arith.constant 0 : i32
    %c0_i32_0 = arith.constant 0 : i32
    %c0_i32_1 = arith.constant 0 : i32
    return %c0_i32, %c0_i32_0 : i32, i32
  }
  func.func @transform_11(%arg0: i32) -> (i32, i32) {
    %c0_i32 = arith.constant 0 : i32
    %c0_i32_0 = arith.constant 0 : i32
    %c0_i32_1 = arith.constant 0 : i32
    return %c0_i32, %c0_i32_0 : i32, i32
  }
  func.func @transform_12(%arg0: i32) -> (i32, i32) {
    %c0_i32 = arith.constant 0 : i32
    %c0_i32_0 = arith.constant 0 : i32
    %c0_i32_1 = arith.constant 0 : i32
    return %c0_i32, %c0_i32_0 : i32, i32
  }
  func.func @transform_13(%arg0: i32) -> (i32, i32) {
    %c0_i32 = arith.constant 0 : i32
    %c0_i32_0 = arith.constant 0 : i32
    %c0_i32_1 = arith.constant 0 : i32
    return %c0_i32, %c0_i32_0 : i32, i32
  }
  func.func @transform_14(%arg0: i32) -> (i32, i32) {
    %c0_i32 = arith.constant 0 : i32
    %c0_i32_0 = arith.constant 0 : i32
    %c0_i32_1 = arith.constant 0 : i32
    return %c0_i32, %c0_i32_0 : i32, i32
  }
  func.func @transform_15(%arg0: i32) -> (i32, i32) {
    %c0_i32 = arith.constant 0 : i32
    %c0_i32_0 = arith.constant 0 : i32
    %c0_i32_1 = arith.constant 0 : i32
    return %c0_i32, %c0_i32_0 : i32, i32
  }
}

</mosaic_0001>

<bundles_post_ra>
// kernel: tpu_custom_call.1
= control target key start
LH: loop header
LB: loop body
LE: loop exit
PB: predicated region body
PF: predicated region fallthrough
CT: control target
= control target key end

     0   :  { %20 = vsyncpa [#allocation3], 0  ;;  %s3640_s0 = inlined_call_operand.hbm [shape: f32[16,32], index: 0, kind: input, shape index: {}]   ;;  %s3641_s1 = inlined_call_operand.hbm [shape: f32[16,16], index: 1, kind: input, shape index: {}]   ;;  %s3642_s2 = inlined_call_operand.hbm [shape: f32[16,16], index: 2, kind: input, shape index: {}]   ;;  %s3643_s3 = inlined_call_operand.vmem [shape: f32[1,32], index: 3, kind: input, shape index: {}]   ;;  %s3644_s4 = inlined_call_operand.vmem [shape: f32[1,32], index: 4, kind: input, shape index: {}]   ;;  %s3645_s5 = inlined_call_operand.vmem [shape: f32[32,96], index: 5, kind: input, shape index: {}]   ;;  %s3646_s6 = inlined_call_operand.vmem [shape: f32[1,96], index: 6, kind: input, shape index: {}]   ;;  %s3647_s7 = inlined_call_operand.vmem [shape: f32[32,32], index: 7, kind: input, shape index: {}]   ;;  %s3648_s8 = inlined_call_operand.vmem [shape: f32[1,32], index: 8, kind: input, shape index: {}]   ;;  %s3649_s9 = inlined_call_operand.vmem [shape: f32[1,32], index: 9, kind: input, shape index: {}]   ;;  %s3650_s10 = inlined_call_operand.vmem [shape: f32[1,32], index: 10, kind: input, shape index: {}]   ;;  %s3651_s11 = inlined_call_operand.vmem [shape: f32[32,64], index: 11, kind: input, shape index: {}]   ;;  %s3652_s12 = inlined_call_operand.vmem [shape: f32[1,64], index: 12, kind: input, shape index: {}]   ;;  %s3653_s13 = inlined_call_operand.vmem [shape: f32[64,32], index: 13, kind: input, shape index: {}]   ;;  %s3654_s14 = inlined_call_operand.vmem [shape: f32[1,32], index: 14, kind: input, shape index: {}]   ;;  %s3655_s15 = inlined_call_operand.hbm [shape: f32[16,32], index: 15, kind: output, shape index: {}]  }
   0x1   :  { %21 = vsyncpa [#allocation6], 0 }
   0x2   :  { %22 = vsyncpa [#allocation4], 0  ;;  %s3052_s18 = smov [#allocation5]   ;;  %s3053_s20 = smov [#allocation2]  }
   0x3   :  { %s40_s19 = sshll.u32 %s3052_s18, 4  ;;  %s28_s21 = sshll.u32 %s3053_s20, 4  ;;  %s41_s19 = int_to_ptr.vmem [resolvable:$true] %s40_s19  ;;  %s3147_s21 = int_to_ptr.vmem [resolvable:$true] %s28_s21 }
   0x4   :  { %s2958_s24 = scalar_lea.hbm %s3641_s1, 256 }
   0x5   :  { %p2959_p0 = scmp.ne.s32.totalorder %s3641_s1, %s2958_s24  ;;  %p2962_p1 = scmp.lt.u32.totalorder %s2958_s24, %s3641_s1 }
   0x7   :  { %p2964_p2 = pnand %p2962_p1, %p2959_p0 }
   0x9   :  { %2967 = shalt.err (!%p2964_p2)
}
   0xa   :  { %s2968_s29 = scalar_lea.vmem %s41_s19, 256  ;;  %p2973_p4 = scmp.lt.s32.totalorder %s41_s19, %s41_s19 }
   0xb   :  { %p2969_p3 = scmp.ne.s32.totalorder %s41_s19, %s2968_s29  ;;  %p2974_p5 = scmp.lt.s32.totalorder %s2968_s29, %s2968_s29 }
   0xd   :  { %p2975_p6 = por %p2974_p5, %p2973_p4 }
   0xf   :  { %p2976_p7 = pnand %p2975_p6, %p2969_p3 }
  0x11   :  { %2979 = shalt.err (!%p2976_p7)
}
  0x12   :  { %s3054_s30 = smov 128   ;;  %s3055_s16 = smov 8  }
  0x13   :  { %46 = dma.hbm_to_vmem [thread:$0]  %s3641_s1, 256, %s41_s19, [#allocation6], %s3054_s30, %s3054_s30, %s3055_s16  }
  0x14   :  { %s2980_s23 = scalar_lea.hbm %s3640_s0, 256 }
  0x15   :  { %p2981_p8 = scmp.ne.s32.totalorder %s3640_s0, %s2980_s23  ;;  %p2984_p9 = scmp.lt.u32.totalorder %s2980_s23, %s3640_s0 }
  0x17   :  { %p2986_p10 = pnand %p2984_p9, %p2981_p8 }
  0x19   :  { %2989 = shalt.err (!%p2986_p10)
}
  0x1a   :  { %s2990_s28 = scalar_lea.vmem %s3147_s21, 256  ;;  %p2995_p12 = scmp.lt.s32.totalorder %s3147_s21, %s3147_s21 }
  0x1b   :  { %p2991_p11 = scmp.ne.s32.totalorder %s3147_s21, %s2990_s28  ;;  %p2996_p13 = scmp.lt.s32.totalorder %s2990_s28, %s2990_s28 }
  0x1d   :  { %p2997_p0 = por %p2996_p13, %p2995_p12 }
  0x1f   :  { %p2998_p1 = pnand %p2997_p0, %p2991_p11 }
  0x21   :  { %3001 = shalt.err (!%p2998_p1)
}
  0x22   :  { %34 = dma.hbm_to_vmem [thread:$0]  %s3640_s0, 256, %s3147_s21, [#allocation3], %s3054_s30, %s3054_s30, %s3055_s16  }
  0x23   :  { %s3056_s29 = smov [#allocation7]   ;;  %s3002_s22 = scalar_lea.hbm %s3642_s2, 256 }
  0x24   :  { %s52_s17 = sshll.u32 %s3056_s29, 4  ;;  %p3003_p2 = scmp.ne.s32.totalorder %s3642_s2, %s3002_s22  ;;  %s53_s17 = int_to_ptr.vmem [resolvable:$true] %s52_s17 }
  0x25   :  { %p3006_p3 = scmp.lt.u32.totalorder %s3002_s22, %s3642_s2 }
  0x27   :  { %p3008_p4 = pnand %p3006_p3, %p3003_p2 }
  0x29   :  { %3011 = shalt.err (!%p3008_p4)
}
  0x2a   :  { %s3012_s27 = scalar_lea.vmem %s53_s17, 256  ;;  %p3017_p6 = scmp.lt.s32.totalorder %s53_s17, %s53_s17 }
  0x2b   :  { %p3013_p5 = scmp.ne.s32.totalorder %s53_s17, %s3012_s27  ;;  %p3018_p7 = scmp.lt.s32.totalorder %s3012_s27, %s3012_s27 }
  0x2d   :  { %p3019_p8 = por %p3018_p7, %p3017_p6 }
  0x2f   :  { %p3020_p9 = pnand %p3019_p8, %p3013_p5 }
  0x31   :  { %3023 = shalt.err (!%p3020_p9)
}
  0x32   :  { %58 = dma.hbm_to_vmem [thread:$0]  %s3642_s2, 256, %s53_s17, [#allocation6], %s3054_s30, %s3054_s30, %s3055_s16  }
  0x33   :  { %3046 = dma.done.wait [#allocation3], 256  }
  0x34   :  { %3047 = vsyncadd [#allocation3], 4294967040 }
  0x35   :  { %3048 = dma.done.wait [#allocation6], 512  }
  0x36   :  { %3049 = vsyncadd [#allocation6], 4294966784  ;;  %vm96_vm0 = vcmask 261120   ;;  %v92_v0 = vld [vmem:[#allocation2] sm:$0xff]  ;;  %v93_v1 = vld [vmem:[#allocation2 + $0x8] sm:$0xff]  ;;  %s3059_s27 = smov 104   ;;  %v272_v53 = vlaneseq }
  0x37   :  { %v97_v2 = vsel %vm96_vm0, %v92_v0, 0.0  ;;  %v100_v3 = vsel %vm96_vm0, %v93_v1, 0.0  ;;  %v155_v14 = vld [vmem:[%s3645_s5] sm:$0xff]  ;;  %v156_v15 = vld [vmem:[%s3645_s5 + $0x8] sm:$0xff]  ;;  %v157_v16 = vld [vmem:[%s3645_s5 + $0x10] sm:$0xff]  ;;  %vm1131_vm5 = vcmask 64512  }
  0x38   :  { %98 = vadd.xlane.f32.xlu0 %v97_v2  ;;  %v2813_v17 = vpack.c.bf16 %v156_v15, %v155_v14  ;;  %v158_v18 = vld [vmem:[%s3645_s5 + $0x18] sm:$0xff]  ;;  %v2589_v36 = vld [vmem:[%s3643_s3] ss:$0 sm:$0xff]  ;;  %s3057_s3 = smov 120   ;;  %v3061_v51 = vmov 1983009808   ;;  %vm3364_vm6 = vmpackc.low %vm1131_vm5, %vm1131_vm5 }
  0x39   :  { %v2817_v19 = vpack.c.bf16 %v158_v18, %v157_v16  ;;  %v2590_v39 = vld [vmem:[%s3644_s4] ss:$0 sm:$0xff]  ;;  %s3058_s4 = smov 112   ;;  %v270_v52 = vunpack.c.l.s4 %v3061_v51  ;;  %v3062_v56 = vmov 1934713408   ;;  %v273_v59 = vshrl.u32 %v272_v53, 7 }
  0x3a   :  { %2814 = vmatprep.subr.bf16.mxu1 %v2813_v17  ;;  %v2591_v46 = vld [vmem:[%s3646_s6] ss:$0 sm:$0xff]  ;;  %s3060_s6 = smov 96   ;;  %v302_v57 = vunpack.c.l.s4 %v3062_v56  ;;  %vm1508_vm7 = vcmask 130048   ;;  %s3063_s0 = smov 64   ;;  %vm2221_vm8 = vcmask 195584  }
  0x3b   :  { %2816 = vmatpush3.bf16.msra.mxu1 %v2813_v17  ;;  %v271_v58 = vunpack.c.0.s8 %v270_v52  ;;  %s3064_s20 = smov 16   ;;  %vm2485_vm13 = vcmask 523264  }
  0x3c   :  { %101 = vadd.xlane.f32.xlu0 %v100_v3  ;;  %2818 = vmatprep.subr.bf16.mxu1 %v2817_v19  ;;  %v303_v62 = vunpack.c.0.s8 %v302_v57 }
  0x3d   :  { %v3254_v63 = vsub.s32 %v271_v58, %v273_v59 }
  0x3f   :  { %2820 = vmatpush3.bf16.msra.mxu1 %v2817_v19 }
  0xc5   :  { %v99_v4 = vpop.xlane.xlu0 %98 }
  0xc6   :  { %v104_v5 = vmul.f32 0.03125, %v99_v4 }
  0xc8   :  { %v106_v6 = vsub.f32 %v92_v0, %v104_v5  ;;  %v3268_v5 = vsub.s32 %v303_v62, %v273_v59 }
  0xc9   :  { %v102_v7 = vpop.xlane.xlu0 %101 }
  0xca   :  { %v105_v8 = vmul.f32 0.03125, %v102_v7  ;;  %v108_v9 = vmul.f32 %v106_v6, %v106_v6  ;;  %v125_v37 = vmul.f32 %v2589_v36, %v106_v6 }
  0xcc   :  { %v107_v10 = vsub.f32 %v93_v1, %v105_v8  ;;  %v110_v11 = vsel %vm96_vm0, %v108_v9, 0.0 }
  0xcd   :  { %111 = vadd.xlane.f32.xlu1 %v110_v11 }
  0xce   :  { %v109_v12 = vmul.f32 %v107_v10, %v107_v10  ;;  %v126_v41 = vmul.f32 %v2589_v36, %v107_v10 }
  0xd0   :  { %v113_v13 = vsel %vm96_vm0, %v109_v12, 0.0 }
  0xd1   :  { %114 = vadd.xlane.f32.xlu1 %v113_v13 }
 0x15a   :  { %v112_v20 = vpop.xlane.xlu1 %111 }
 0x15b   :  { %v117_v21 = vmul.f32 0.032258064, %v112_v20 }
 0x15d   :  { %2908 = vrsqrt.f32 %v117_v21  ;;  %vm129_vm1 = vcmp.eq.f32.partialorder %v117_v21, inf  ;;  %v132_v26 = vand.u32 2147483648, %v117_v21  ;;  %vm131_vm2 = vcmp.eq.f32.partialorder %v117_v21, 0.0 }
 0x15e   :  { %v115_v22 = vpop.xlane.xlu1 %114 }
 0x15f   :  { %v118_v23 = vmul.f32 0.032258064, %v115_v22 }
 0x161   :  { %2910 = vrsqrt.f32 %v118_v23  ;;  %vm136_vm3 = vcmp.eq.f32.partialorder %v118_v23, inf  ;;  %v139_v32 = vand.u32 2147483648, %v118_v23  ;;  %vm138_vm4 = vcmp.eq.f32.partialorder %v118_v23, 0.0 }
 0x167   :  { %v2909_v24 = vpop.eup %2908 }
 0x168   :  { %v128_v25 = vmul.f32 %v2909_v24, %v117_v21 }
 0x16a   :  { %v130_v27 = vsel %vm129_vm1, %v117_v21, %v128_v25 }
 0x16b   :  { %v2911_v28 = vpop.eup %2910  ;;  %v133_v29 = vsel %vm131_vm2, %v132_v26, %v130_v27 }
 0x16c   :  { %v135_v30 = vmul.f32 %v2911_v28, %v118_v23  ;;  %v141_v31 = vadd.f32 1e-06, %v133_v29 }
 0x16e   :  { %v137_v33 = vsel %vm136_vm3, %v118_v23, %v135_v30  ;;  %2912 = vrcp.f32 %v141_v31 }
 0x16f   :  { %v140_v34 = vsel %vm138_vm4, %v139_v32, %v137_v33 }
 0x170   :  { %v142_v35 = vadd.f32 1e-06, %v140_v34 }
 0x172   :  { %2914 = vrcp.f32 %v142_v35 }
 0x178   :  { %v2913_v38 = vpop.eup %2912 }
 0x179   :  { %v144_v40 = vmul.f32 %v2913_v38, %v125_v37 }
 0x17b   :  { %v153_v42 = vadd.f32 %v2590_v39, %v144_v40 }
 0x17c   :  { %v2915_v43 = vpop.eup %2914 }
 0x17d   :  { %v146_v44 = vmul.f32 %v2915_v43, %v126_v41  ;;  %2713 = vmatprep.mubr.msk.f32.mxu1 %vm96_vm0, %v153_v42 }
 0x17f   :  { %v154_v45 = vadd.f32 %v2590_v39, %v146_v44 }
 0x181   :  { %2714 = vmatmul.mubr.msk.f32.vlgmr.msra.gmra.mrb[0].mxu1 %vm96_vm0, %v154_v45 }
 0x254   :  { %v2715_v47 = vpop.f32.mrb[0].mxu1 }
 0x255   :  { %v3226_v48 = vadd.f32 %v2715_v47, %v2591_v46  ;;  %v238_v49 = vpop.f32.mrb[1].mxu1 }
 0x256   :  { %v3228_v50 = vadd.f32 %v2591_v46, %v238_v49 }
 0x257   :  { %251 = vrot.lane.b32.xlu1 %v3226_v48, %s3057_s3 }
 0x258   :  { %249 = vrot.lane.b32.xlu0 %v3228_v50, %s3057_s3 }
 0x25b   :  { %257 = vrot.lane.b32.xlu1 %v3226_v48, %s3058_s4 }
 0x25c   :  { %261 = vrot.lane.b32.xlu0 %v3228_v50, %s3059_s27 }
 0x25f   :  { %255 = vrot.lane.b32.xlu1 %v3228_v50, %s3058_s4 }
 0x260   :  { %539 = vrot.lane.b32.xlu0 %v3228_v50, %s3060_s6 }
 0x263   :  { %263 = vrot.lane.b32.xlu1 %v3226_v48, %s3059_s27 }
 0x267   :  { %541 = vrot.lane.b32.xlu1 %v3226_v48, %s3060_s6 }
 0x2c9   :  { %v3240_v54 = vpop.permute.xlu1 %251 }
 0x2ca   :  { %545 = vrot.lane.b32.xlu1 %v3240_v54, %s3060_s6  ;;  %v3244_v55 = vpop.permute.xlu0 %249 }
 0x2cb   :  { %543 = vrot.lane.b32.xlu0 %v3244_v55, %s3060_s6 }
 0x2cd   :  { %v3248_v60 = vpop.permute.xlu1 %257 }
 0x2ce   :  { %549 = vrot.lane.b32.xlu1 %v3248_v60, %s3060_s6  ;;  %v3252_v61 = vpop.permute.xlu0 %261  ;;  %v335_v41 = vcombine.low %v3226_v48, %v3248_v60  ;;  %v336_v42 = vcombine.high %v3226_v48, %v3248_v60 }
 0x2cf   :  { %v283_v0 = vcombine.low %v3244_v55, %v3252_v61  ;;  %v284_v1 = vcombine.high %v3244_v55, %v3252_v61 }
 0x2d0   :  { %v343_v46 = vrot.slane %v335_v41, %v3254_v63  ;;  %v350_v47 = vrot.slane %v336_v42, %v3254_v63 }
 0x2d1   :  { %v3260_v2 = vpop.permute.xlu1 %255  ;;  %v291_v6 = vrot.slane %v283_v0, %v3254_v63  ;;  %v298_v7 = vrot.slane %v284_v1, %v3254_v63 }
 0x2d2   :  { %v267_v3 = vcombine.low %v3228_v50, %v3260_v2  ;;  %v268_v4 = vcombine.high %v3228_v50, %v3260_v2  ;;  %547 = vrot.lane.b32.xlu0 %v3260_v2, %s3060_s6  ;;  %v540_v49 = vpop.permute.xlu0 %539 }
 0x2d4   :  { %v275_v8 = vrot.slane %v267_v3, %v3254_v63  ;;  %v282_v9 = vrot.slane %v268_v4, %v3254_v63 }
 0x2d5   :  { %v3274_v10 = vpop.permute.xlu1 %263 }
 0x2d6   :  { %v299_v11 = vcombine.low %v275_v8, %v291_v6  ;;  %v300_v12 = vcombine.high %v275_v8, %v291_v6  ;;  %v315_v13 = vcombine.low %v282_v9, %v298_v7  ;;  %v316_v14 = vcombine.high %v282_v9, %v298_v7  ;;  %553 = vrot.lane.b32.xlu1 %v3274_v10, %s3060_s6 }
 0x2d7   :  { %551 = vrot.lane.b32.xlu0 %v3252_v61, %s3060_s6  ;;  %v351_v39 = vcombine.low %v3240_v54, %v3274_v10  ;;  %v352_v40 = vcombine.high %v3240_v54, %v3274_v10 }
 0x2d8   :  { %v307_v15 = vrot.slane %v299_v11, %v3268_v5  ;;  %v314_v16 = vrot.slane %v300_v12, %v3268_v5  ;;  %v323_v17 = vrot.slane %v315_v13, %v3268_v5  ;;  %v330_v18 = vrot.slane %v316_v14, %v3268_v5 }
 0x2d9   :  { %v359_v43 = vrot.slane %v351_v39, %v3254_v63  ;;  %v366_v44 = vrot.slane %v352_v40, %v3254_v63  ;;  %v542_v45 = vpop.permute.xlu1 %541 }
 0x2da   :  { %v403_v19 = vcombine.low %v307_v15, %v314_v16  ;;  %v2594_v20 = vcombine.high %v307_v15, %v314_v16  ;;  %v419_v21 = vcombine.low %v323_v17, %v330_v18  ;;  %v2595_v22 = vcombine.high %v323_v17, %v330_v18 }
 0x2db   :  { %v367_v51 = vcombine.low %v343_v46, %v359_v43  ;;  %v368_v52 = vcombine.high %v343_v46, %v359_v43  ;;  %v383_v53 = vcombine.low %v350_v47, %v366_v44  ;;  %v384_v56 = vcombine.high %v350_v47, %v366_v44 }
 0x2dc   :  { %v410_v23 = vrot.slane %v403_v19, %v3254_v63  ;;  %v418_v24 = vrot.slane %v2594_v20, %v3254_v63  ;;  %v426_v25 = vrot.slane %v419_v21, %v3254_v63  ;;  %v434_v26 = vrot.slane %v2595_v22, %v3254_v63 }
 0x2dd   :  { %v375_v59 = vrot.slane %v367_v51, %v3268_v5  ;;  %v382_v62 = vrot.slane %v368_v52, %v3268_v5  ;;  %v391_v0 = vrot.slane %v383_v53, %v3268_v5  ;;  %v398_v1 = vrot.slane %v384_v56, %v3268_v5 }
 0x2de   :  { %v435_v27 = vcombine.low %v410_v23, %v418_v24  ;;  %v451_v28 = vcombine.low %v426_v25, %v434_v26  ;;  %v436_v29 = vcombine.high %v410_v23, %v418_v24  ;;  %v452_v30 = vcombine.high %v426_v25, %v434_v26 }
 0x2df   :  { %v471_v6 = vcombine.low %v375_v59, %v382_v62  ;;  %v2596_v7 = vcombine.high %v375_v59, %v382_v62  ;;  %v487_v8 = vcombine.low %v391_v0, %v398_v1  ;;  %v2597_v9 = vcombine.high %v391_v0, %v398_v1 }
 0x2e0   :  { %v443_v31 = vrot.slane %v435_v27, %v3268_v5  ;;  %v459_v32 = vrot.slane %v451_v28, %v3268_v5  ;;  %v3291_v33 = vrot.slane %v436_v29, %v3268_v5  ;;  %v3294_v34 = vrot.slane %v452_v30, %v3268_v5 }
 0x2e1   :  { %v3319_v16 = vrot.slane %v471_v6, %v3254_v63  ;;  %v3322_v17 = vrot.slane %v2596_v7, %v3254_v63  ;;  %v3325_v21 = vrot.slane %v487_v8, %v3254_v63  ;;  %v3328_v22 = vrot.slane %v2597_v9, %v3254_v63 }
 0x2e2   :  { %v467_v35 = vcombine.low %v443_v31, %v459_v32  ;;  %v468_v36 = vcombine.high %v443_v31, %v459_v32  ;;  %v469_v37 = vcombine.low %v3291_v33, %v3294_v34  ;;  %v470_v38 = vcombine.high %v3291_v33, %v3294_v34 }
 0x2e4   :  { %2720 = vmatprep.mubr.msk.f32.mxu1 %vm1131_vm5, %v467_v35  ;;  %2727 = vmatprep.mubr.msk.f32.mxu0 %vm1131_vm5, %v468_v36 }
 0x33c   :  { %v546_v57 = vpop.permute.xlu1 %545 }
 0x33d   :  { %v544_v58 = vpop.permute.xlu0 %543 }
 0x340   :  { %v550_v3 = vpop.permute.xlu1 %549 }
 0x341   :  { %v631_v11 = vcombine.low %v542_v45, %v550_v3  ;;  %v632_v12 = vcombine.high %v542_v45, %v550_v3 }
 0x343   :  { %v639_v25 = vrot.slane %v631_v11, %v3254_v63  ;;  %v646_v26 = vrot.slane %v632_v12, %v3254_v63 }
 0x344   :  { %v548_v4 = vpop.permute.xlu0 %547 }
 0x345   :  { %v563_v13 = vcombine.low %v540_v49, %v548_v4  ;;  %v564_v14 = vcombine.high %v540_v49, %v548_v4 }
 0x347   :  { %v571_v29 = vrot.slane %v563_v13, %v3254_v63  ;;  %v578_v30 = vrot.slane %v564_v14, %v3254_v63 }
 0x348   :  { %v554_v15 = vpop.permute.xlu1 %553 }
 0x349   :  { %v647_v18 = vcombine.low %v546_v57, %v554_v15  ;;  %v648_v19 = vcombine.high %v546_v57, %v554_v15  ;;  %v552_v20 = vpop.permute.xlu0 %551 }
 0x34a   :  { %v579_v23 = vcombine.low %v544_v58, %v552_v20  ;;  %v580_v24 = vcombine.high %v544_v58, %v552_v20 }
 0x34b   :  { %v655_v27 = vrot.slane %v647_v18, %v3254_v63  ;;  %v662_v28 = vrot.slane %v648_v19, %v3254_v63 }
 0x34c   :  { %v587_v31 = vrot.slane %v579_v23, %v3254_v63  ;;  %v594_v32 = vrot.slane %v580_v24, %v3254_v63 }
 0x34d   :  { %v663_v35 = vcombine.low %v639_v25, %v655_v27  ;;  %v664_v36 = vcombine.high %v639_v25, %v655_v27  ;;  %v679_v39 = vcombine.low %v646_v26, %v662_v28  ;;  %v680_v40 = vcombine.high %v646_v26, %v662_v28 }
 0x34e   :  { %v595_v41 = vcombine.low %v571_v29, %v587_v31  ;;  %v596_v42 = vcombine.high %v571_v29, %v587_v31  ;;  %v611_v43 = vcombine.low %v578_v30, %v594_v32  ;;  %v612_v44 = vcombine.high %v578_v30, %v594_v32 }
 0x34f   :  { %v671_v45 = vrot.slane %v663_v35, %v3268_v5  ;;  %v678_v46 = vrot.slane %v664_v36, %v3268_v5  ;;  %v687_v47 = vrot.slane %v679_v39, %v3268_v5  ;;  %v694_v49 = vrot.slane %v680_v40, %v3268_v5 }
 0x350   :  { %v603_v51 = vrot.slane %v595_v41, %v3268_v5  ;;  %v610_v52 = vrot.slane %v596_v42, %v3268_v5  ;;  %v619_v53 = vrot.slane %v611_v43, %v3268_v5  ;;  %v626_v56 = vrot.slane %v612_v44, %v3268_v5 }
 0x351   :  { %v767_v57 = vcombine.low %v671_v45, %v678_v46  ;;  %v2600_v58 = vcombine.high %v671_v45, %v678_v46  ;;  %v783_v59 = vcombine.low %v687_v47, %v694_v49  ;;  %v2601_v62 = vcombine.high %v687_v47, %v694_v49 }
 0x352   :  { %v699_v0 = vcombine.low %v603_v51, %v610_v52  ;;  %v2598_v1 = vcombine.high %v603_v51, %v610_v52  ;;  %v715_v3 = vcombine.low %v619_v53, %v626_v56  ;;  %v2599_v4 = vcombine.high %v619_v53, %v626_v56 }
 0x353   :  { %v774_v6 = vrot.slane %v767_v57, %v3254_v63  ;;  %v782_v7 = vrot.slane %v2600_v58, %v3254_v63  ;;  %v790_v8 = vrot.slane %v783_v59, %v3254_v63  ;;  %v798_v9 = vrot.slane %v2601_v62, %v3254_v63 }
 0x354   :  { %v706_v11 = vrot.slane %v699_v0, %v3254_v63  ;;  %v714_v12 = vrot.slane %v2598_v1, %v3254_v63  ;;  %v722_v13 = vrot.slane %v715_v3, %v3254_v63  ;;  %v730_v14 = vrot.slane %v2599_v4, %v3254_v63 }
 0x355   :  { %v799_v15 = vcombine.low %v774_v6, %v782_v7  ;;  %v815_v18 = vcombine.low %v790_v8, %v798_v9  ;;  %v800_v19 = vcombine.high %v774_v6, %v782_v7  ;;  %v816_v20 = vcombine.high %v790_v8, %v798_v9  ;;  %v1488_v7 = vld [vmem:[#allocation5] sm:$0xff] }
 0x356   :  { %v731_v23 = vcombine.low %v706_v11, %v714_v12  ;;  %v747_v24 = vcombine.low %v722_v13, %v730_v14  ;;  %v732_v25 = vcombine.high %v706_v11, %v714_v12  ;;  %v748_v26 = vcombine.high %v722_v13, %v730_v14 }
 0x357   :  { %v807_v27 = vrot.slane %v799_v15, %v3268_v5  ;;  %v823_v28 = vrot.slane %v815_v18, %v3268_v5  ;;  %v814_v29 = vrot.slane %v800_v19, %v3268_v5  ;;  %v830_v30 = vrot.slane %v816_v20, %v3268_v5  ;;  %v1498_v18 = vld [vmem:[#allocation7] sm:$0xff] }
 0x358   :  { %v739_v31 = vrot.slane %v731_v23, %v3268_v5  ;;  %v755_v32 = vrot.slane %v747_v24, %v3268_v5  ;;  %v746_v35 = vrot.slane %v732_v25, %v3268_v5  ;;  %v762_v36 = vrot.slane %v748_v26, %v3268_v5 }
 0x359   :  { %v831_v39 = vcombine.low %v807_v27, %v823_v28  ;;  %v832_v40 = vcombine.high %v807_v27, %v823_v28  ;;  %v833_v41 = vcombine.low %v814_v29, %v830_v30  ;;  %v834_v42 = vcombine.high %v814_v29, %v830_v30 }
 0x35a   :  { %v763_v43 = vcombine.low %v739_v31, %v755_v32  ;;  %v764_v44 = vcombine.high %v739_v31, %v755_v32  ;;  %v765_v45 = vcombine.low %v746_v35, %v762_v36  ;;  %v766_v46 = vcombine.high %v746_v35, %v762_v36 }
 0x35b   :  { %v503_v52 = vcombine.low %v3319_v16, %v3322_v17  ;;  %v519_v53 = vcombine.low %v3325_v21, %v3328_v22  ;;  %v504_v1 = vcombine.high %v3319_v16, %v3322_v17  ;;  %v520_v3 = vcombine.high %v3325_v21, %v3328_v22 }
 0x35c   :  { %v2821_v49 = vpack.c.bf16 %v831_v39, %v763_v43  ;;  %v2827_v51 = vpack.c.bf16 %v832_v40, %v764_v44  ;;  %v2833_v56 = vpack.c.bf16 %v833_v41, %v765_v45  ;;  %v2839_v57 = vpack.c.bf16 %v834_v42, %v766_v46 }
 0x35d   :  { %v511_v58 = vrot.slane %v503_v52, %v3268_v5  ;;  %v527_v59 = vrot.slane %v519_v53, %v3268_v5  ;;  %v518_v16 = vrot.slane %v504_v1, %v3268_v5  ;;  %v534_v17 = vrot.slane %v520_v3, %v3268_v5 }
 0x35e   :  { %2823 = vmatprep.subr.msk.bf16.mxu1 %vm3364_vm6, %v2821_v49  ;;  %2829 = vmatprep.subr.msk.bf16.mxu0 %vm3364_vm6, %v2827_v51 }
 0x35f   :  { %2826 = vmatpush3.bf16.xpose.msk.msra.mxu1 %vm3364_vm6, %v2821_v49  ;;  %2832 = vmatpush3.bf16.xpose.msk.msra.mxu0 %vm3364_vm6, %v2827_v51  ;;  %v535_v62 = vcombine.low %v511_v58, %v527_v59  ;;  %v536_v0 = vcombine.high %v511_v58, %v527_v59  ;;  %v537_v21 = vcombine.low %v518_v16, %v534_v17 }
 0x360   :  { %2835 = vmatprep.subr.msk.bf16.mxu1 %vm3364_vm6, %v2833_v56  ;;  %2841 = vmatprep.subr.msk.bf16.mxu0 %vm3364_vm6, %v2839_v57  ;;  %v538_v22 = vcombine.high %v518_v16, %v534_v17 }
 0x366   :  { %2721 = vmatmul.mubr.msk.f32.vlgmr.msra.gmra.mrb[2].mxu1 %vm1131_vm5, %v535_v62  ;;  %2728 = vmatmul.mubr.msk.f32.vlgmr.msra.gmra.mrb[0].mxu0 %vm1131_vm5, %v536_v0 }
 0x367   :  { %2838 = vmatpush3.bf16.xpose.msk.msra.mxu1 %vm3364_vm6, %v2833_v56  ;;  %2734 = vmatprep.mubr.msk.f32.mxu1 %vm1131_vm5, %v469_v37  ;;  %v1489_v37 = vld [vmem:[#allocation5 + $0x8] sm:$0xff] }
 0x368   :  { %2844 = vmatpush3.bf16.xpose.msk.msra.mxu0 %vm3364_vm6, %v2839_v57  ;;  %2741 = vmatprep.mubr.msk.f32.mxu0 %vm1131_vm5, %v470_v38  ;;  %v1499_v38 = vld [vmem:[#allocation7 + $0x8] sm:$0xff] }
 0x36e   :  { %2735 = vmatmul.mubr.msk.f32.vlgmr.msra.gmra.mrb[4].mxu1 %vm1131_vm5, %v537_v21 }
 0x36f   :  { %2742 = vmatmul.mubr.msk.f32.vlgmr.msra.gmra.mrb[2].mxu0 %vm1131_vm5, %v538_v22 }
 0x439   :  { %v2722_v4 = vpop.f32.mrb[2].mxu1  ;;  %v2729_v6 = vpop.f32.mrb[0].mxu0 }
 0x43a   :  { %v1481_v8 = vmul.f32 0.35355338, %v2722_v4  ;;  %v1483_v9 = vmul.f32 0.35355338, %v2729_v6  ;;  %v1210_v11 = vpop.f32.mrb[3].mxu1  ;;  %v1297_v33 = vpop.f32.mrb[1].mxu0 }
 0x43b   :  { %v1480_v34 = vmul.f32 0.35355338, %v1210_v11  ;;  %v1482_v14 = vmul.f32 0.35355338, %v1297_v33 }
 0x43c   :  { %v1491_v12 = vmul.f32 %v1489_v37, %v1481_v8  ;;  %v1493_v13 = vmul.f32 %v1489_v37, %v1483_v9 }
 0x43d   :  { %v1490_v15 = vmul.f32 %v1488_v7, %v1480_v34  ;;  %v1492_v23 = vmul.f32 %v1488_v7, %v1482_v14 }
 0x43e   :  { %v1503_v19 = vadd.f32 %v1499_v38, %v1493_v13  ;;  %v1501_v20 = vadd.f32 %v1499_v38, %v1491_v12 }
 0x43f   :  { %v1500_v26 = vadd.f32 %v1498_v18, %v1490_v15  ;;  %v1502_v40 = vadd.f32 %v1498_v18, %v1492_v23 }
 0x440   :  { %v1518_v24 = vsel %vm1508_vm7, %v1503_v19, -inf  ;;  %v1512_v25 = vsel %vm1508_vm7, %v1501_v20, -inf }
 0x441   :  { %1519 = vmax.xlane.f32.xlu0 %v1518_v24  ;;  %1513 = vmax.xlane.f32.xlu1 %v1512_v25  ;;  %v2736_v27 = vpop.f32.mrb[4].mxu1  ;;  %v1509_v39 = vsel %vm1508_vm7, %v1500_v26, -inf  ;;  %v1515_v45 = vsel %vm1508_vm7, %v1502_v40, -inf }
 0x442   :  { %v2743_v28 = vpop.f32.mrb[2].mxu0  ;;  %v1384_v29 = vpop.f32.mrb[5].mxu1  ;;  %v1485_v35 = vmul.f32 0.35355338, %v2736_v27 }
 0x443   :  { %v1487_v30 = vmul.f32 0.35355338, %v2743_v28  ;;  %v1484_v31 = vmul.f32 0.35355338, %v1384_v29  ;;  %v1471_v32 = vpop.f32.mrb[3].mxu0 }
 0x444   :  { %v1486_v36 = vmul.f32 0.35355338, %v1471_v32  ;;  %v1495_v44 = vmul.f32 %v1489_v37, %v1485_v35 }
 0x445   :  { %v1494_v41 = vmul.f32 %v1488_v7, %v1484_v31  ;;  %1510 = vmax.xlane.f32.xlu0 %v1509_v39  ;;  %v1497_v42 = vmul.f32 %v1489_v37, %v1487_v30 }
 0x446   :  { %v1496_v43 = vmul.f32 %v1488_v7, %v1486_v36  ;;  %v1505_v53 = vadd.f32 %v1499_v38, %v1495_v44 }
 0x447   :  { %v1504_v47 = vadd.f32 %v1498_v18, %v1494_v41  ;;  %v1507_v51 = vadd.f32 %v1499_v38, %v1497_v42 }
 0x448   :  { %v1506_v46 = vadd.f32 %v1498_v18, %v1496_v43  ;;  %v1524_v57 = vsel %vm1508_vm7, %v1505_v53, -inf }
 0x449   :  { %1516 = vmax.xlane.f32.xlu0 %v1515_v45  ;;  %v1521_v52 = vsel %vm1508_vm7, %v1504_v47, -inf  ;;  %v1530_v56 = vsel %vm1508_vm7, %v1507_v51, -inf }
 0x44a   :  { %v1527_v49 = vsel %vm1508_vm7, %v1506_v46, -inf }
 0x44b   :  { %1528 = vmax.xlane.f32.xlu1 %v1527_v49 }
 0x44d   :  { %1522 = vmax.xlane.f32.xlu0 %v1521_v52 }
 0x44f   :  { %1531 = vmax.xlane.f32.xlu1 %v1530_v56 }
 0x451   :  { %1525 = vmax.xlane.f32.xlu0 %v1524_v57 }
 0x460   :  { %837 = vrot.lane.b32.xlu1 %v3226_v48, %s3063_s0 }
 0x464   :  { %839 = vrot.lane.b32.xlu1 %v3244_v55, %s3063_s0 }
 0x467   :  { %835 = vrot.lane.b32.xlu0 %v3228_v50, %s3063_s0 }
 0x468   :  { %841 = vrot.lane.b32.xlu1 %v3240_v54, %s3063_s0 }
 0x46b   :  { %843 = vrot.lane.b32.xlu0 %v3260_v2, %s3063_s0 }
 0x46c   :  { %845 = vrot.lane.b32.xlu1 %v3248_v60, %s3063_s0 }
 0x46f   :  { %847 = vrot.lane.b32.xlu0 %v3252_v61, %s3063_s0 }
 0x470   :  { %849 = vrot.lane.b32.xlu1 %v3274_v10, %s3063_s0 }
 0x4ce   :  { %v1520_v58 = vpop.xlane.xlu0 %1519  ;;  %v1514_v59 = vpop.xlane.xlu1 %1513 }
 0x4cf   :  { %v1536_v62 = vsub.f32 %v1503_v19, %v1520_v58  ;;  %v1534_v0 = vsub.f32 %v1501_v20, %v1514_v59 }
 0x4d1   :  { %v1543_v1 = vmul.f32 1.442695, %v1534_v0  ;;  %v1547_v48 = vmul.f32 1.442695, %v1536_v62 }
 0x4d2   :  { %v1511_v3 = vpop.xlane.xlu0 %1510 }
 0x4d3   :  { %v1533_v55 = vsub.f32 %v1500_v26, %v1511_v3  ;;  %2916 = vpow2.f32 %v1543_v1 }
 0x4d4   :  { %2918 = vpow2.f32 %v1547_v48 }
 0x4d5   :  { %v1541_v50 = vmul.f32 1.442695, %v1533_v55 }
 0x4d6   :  { %v1517_v54 = vpop.xlane.xlu0 %1516 }
 0x4d7   :  { %2920 = vpow2.f32 %v1541_v50  ;;  %v1535_v2 = vsub.f32 %v1502_v40, %v1517_v54 }
 0x4d8   :  { %v1529_v16 = vpop.xlane.xlu1 %1528 }
 0x4d9   :  { %v1545_v60 = vmul.f32 1.442695, %v1535_v2  ;;  %v1539_v17 = vsub.f32 %v1506_v46, %v1529_v16 }
 0x4da   :  { %v1523_v61 = vpop.xlane.xlu0 %1522 }
 0x4db   :  { %2922 = vpow2.f32 %v1545_v60  ;;  %v1537_v10 = vsub.f32 %v1504_v47, %v1523_v61  ;;  %v1553_v21 = vmul.f32 1.442695, %v1539_v17 }
 0x4dc   :  { %v1532_v22 = vpop.xlane.xlu1 %1531 }
 0x4dd   :  { %v1549_v4 = vmul.f32 1.442695, %v1537_v10  ;;  %v1540_v37 = vsub.f32 %v1507_v51, %v1532_v22  ;;  %v3424_v6 = vpop.eup %2916 }
 0x4de   :  { %v1526_v7 = vpop.xlane.xlu0 %1525  ;;  %v1560_v11 = vsel %vm1508_vm7, %v3424_v6, 0.0  ;;  %v3428_v33 = vpop.eup %2918 }
 0x4df   :  { %2924 = vpow2.f32 %v1549_v4  ;;  %v1555_v8 = vmul.f32 1.442695, %v1540_v37  ;;  %v1538_v9 = vsub.f32 %v1505_v53, %v1526_v7  ;;  %1561 = vadd.xlane.f32.xlu1 %v1560_v11  ;;  %v1566_v15 = vsel %vm1508_vm7, %v3428_v33, 0.0 }
 0x4e0   :  { %2926 = vpow2.f32 %v1553_v21  ;;  %v838_v34 = vpop.permute.xlu1 %837 }
 0x4e1   :  { %v3430_v38 = vpop.eup %2920  ;;  %2928 = vpow2.f32 %v1555_v8  ;;  %v1551_v12 = vmul.f32 1.442695, %v1538_v9 }
 0x4e2   :  { %v836_v13 = vpop.permute.xlu0 %835  ;;  %v1557_v14 = vsel %vm1508_vm7, %v3430_v38, 0.0 }
 0x4e3   :  { %1558 = vadd.xlane.f32.xlu0 %v1557_v14  ;;  %1567 = vadd.xlane.f32.xlu1 %v1566_v15  ;;  %2930 = vpow2.f32 %v1551_v12 }
 0x4e4   :  { %v840_v18 = vpop.permute.xlu1 %839 }
 0x4e5   :  { %v3436_v19 = vpop.eup %2922 }
 0x4e6   :  { %v844_v20 = vpop.permute.xlu0 %843  ;;  %v1563_v23 = vsel %vm1508_vm7, %v3436_v19, 0.0 }
 0x4e7   :  { %1564 = vadd.xlane.f32.xlu0 %v1563_v23  ;;  %v859_v26 = vcombine.low %v836_v13, %v844_v20  ;;  %v860_v27 = vcombine.high %v836_v13, %v844_v20 }
 0x4e8   :  { %v842_v24 = vpop.permute.xlu1 %841 }
 0x4e9   :  { %v3440_v25 = vpop.eup %2924  ;;  %v867_v40 = vrot.slane %v859_v26, %v3254_v63  ;;  %v874_v41 = vrot.slane %v860_v27, %v3254_v63 }
 0x4ea   :  { %v3442_v28 = vpop.eup %2926  ;;  %v848_v29 = vpop.permute.xlu0 %847  ;;  %v1569_v30 = vsel %vm1508_vm7, %v3440_v25, 0.0 }
 0x4eb   :  { %v3446_v31 = vpop.eup %2928  ;;  %v875_v32 = vcombine.low %v840_v18, %v848_v29  ;;  %v876_v35 = vcombine.high %v840_v18, %v848_v29  ;;  %1570 = vadd.xlane.f32.xlu0 %v1569_v30  ;;  %v1575_v44 = vsel %vm1508_vm7, %v3442_v28, 0.0 }
 0x4ec   :  { %v846_v36 = vpop.permute.xlu1 %845  ;;  %v1578_v39 = vsel %vm1508_vm7, %v3446_v31, 0.0 }
 0x4ed   :  { %v883_v42 = vrot.slane %v875_v32, %v3254_v63  ;;  %v890_v43 = vrot.slane %v876_v35, %v3254_v63  ;;  %1579 = vadd.xlane.f32.xlu1 %v1578_v39  ;;  %v3456_v45 = vpop.eup %2930  ;;  %v927_v52 = vcombine.low %v838_v34, %v846_v36  ;;  %v928_v53 = vcombine.high %v838_v34, %v846_v36 }
 0x4ee   :  { %v1572_v48 = vsel %vm1508_vm7, %v3456_v45, 0.0 }
 0x4ef   :  { %v891_v46 = vcombine.low %v867_v40, %v883_v42  ;;  %v892_v47 = vcombine.high %v867_v40, %v883_v42  ;;  %v907_v49 = vcombine.low %v874_v41, %v890_v43  ;;  %v908_v51 = vcombine.high %v874_v41, %v890_v43  ;;  %1576 = vadd.xlane.f32.xlu0 %v1575_v44 }
 0x4f0   :  { %v850_v56 = vpop.permute.xlu1 %849  ;;  %v935_v2 = vrot.slane %v927_v52, %v3254_v63  ;;  %v942_v16 = vrot.slane %v928_v53, %v3254_v63 }
 0x4f1   :  { %v899_v57 = vrot.slane %v891_v46, %v3268_v5  ;;  %v906_v58 = vrot.slane %v892_v47, %v3268_v5  ;;  %v915_v59 = vrot.slane %v907_v49, %v3268_v5  ;;  %v922_v62 = vrot.slane %v908_v51, %v3268_v5 }
 0x4f2   :  { %v943_v0 = vcombine.low %v842_v24, %v850_v56  ;;  %v944_v1 = vcombine.high %v842_v24, %v850_v56 }
 0x4f3   :  { %v995_v3 = vcombine.low %v899_v57, %v906_v58  ;;  %v2602_v55 = vcombine.high %v899_v57, %v906_v58  ;;  %v1011_v50 = vcombine.low %v915_v59, %v922_v62  ;;  %v2603_v54 = vcombine.high %v915_v59, %v922_v62  ;;  %1573 = vadd.xlane.f32.xlu0 %v1572_v48 }
 0x4f4   :  { %v951_v60 = vrot.slane %v943_v0, %v3254_v63  ;;  %v958_v17 = vrot.slane %v944_v1, %v3254_v63 }
 0x4f5   :  { %v1002_v61 = vrot.slane %v995_v3, %v3254_v63  ;;  %v1010_v10 = vrot.slane %v2602_v55, %v3254_v63  ;;  %v1018_v21 = vrot.slane %v1011_v50, %v3254_v63  ;;  %v1026_v22 = vrot.slane %v2603_v54, %v3254_v63 }
 0x4f6   :  { %v959_v4 = vcombine.low %v935_v2, %v951_v60  ;;  %v960_v37 = vcombine.high %v935_v2, %v951_v60  ;;  %v975_v7 = vcombine.low %v942_v16, %v958_v17  ;;  %v976_v8 = vcombine.high %v942_v16, %v958_v17 }
 0x4f7   :  { %v1028_v9 = vcombine.high %v1002_v61, %v1010_v10  ;;  %v1044_v11 = vcombine.high %v1018_v21, %v1026_v22  ;;  %v1027_v15 = vcombine.low %v1002_v61, %v1010_v10  ;;  %v1043_v18 = vcombine.low %v1018_v21, %v1026_v22 }
 0x4f8   :  { %v967_v34 = vrot.slane %v959_v4, %v3268_v5  ;;  %v974_v12 = vrot.slane %v960_v37, %v3268_v5  ;;  %v983_v13 = vrot.slane %v975_v7, %v3268_v5  ;;  %v990_v14 = vrot.slane %v976_v8, %v3268_v5 }
 0x4f9   :  { %v1042_v20 = vrot.slane %v1028_v9, %v3268_v5  ;;  %v1058_v23 = vrot.slane %v1044_v11, %v3268_v5  ;;  %v1035_v40 = vrot.slane %v1027_v15, %v3268_v5  ;;  %v1051_v41 = vrot.slane %v1043_v18, %v3268_v5 }
 0x4fa   :  { %v1063_v24 = vcombine.low %v967_v34, %v974_v12  ;;  %v2604_v26 = vcombine.high %v967_v34, %v974_v12  ;;  %v1079_v27 = vcombine.low %v983_v13, %v990_v14  ;;  %v2605_v29 = vcombine.high %v983_v13, %v990_v14 }
 0x4fb   :  { %v1062_v30 = vcombine.high %v1042_v20, %v1058_v23  ;;  %v1059_v53 = vcombine.low %v1035_v40, %v1051_v41  ;;  %v1061_v56 = vcombine.low %v1042_v20, %v1058_v23  ;;  %v1060_v48 = vcombine.high %v1035_v40, %v1051_v41 }
 0x4fc   :  { %v1070_v32 = vrot.slane %v1063_v24, %v3254_v63  ;;  %v1078_v35 = vrot.slane %v2604_v26, %v3254_v63  ;;  %v1086_v36 = vrot.slane %v1079_v27, %v3254_v63  ;;  %v1094_v39 = vrot.slane %v2605_v29, %v3254_v63 }
 0x4fe   :  { %v1095_v42 = vcombine.low %v1070_v32, %v1078_v35  ;;  %v1111_v43 = vcombine.low %v1086_v36, %v1094_v39  ;;  %v1096_v44 = vcombine.high %v1070_v32, %v1078_v35  ;;  %v1112_v46 = vcombine.high %v1086_v36, %v1094_v39 }
 0x500   :  { %v1103_v47 = vrot.slane %v1095_v42, %v3268_v5  ;;  %v1119_v49 = vrot.slane %v1111_v43, %v3268_v5  ;;  %v1110_v51 = vrot.slane %v1096_v44, %v3268_v5  ;;  %v1126_v52 = vrot.slane %v1112_v46, %v3268_v5 }
 0x502   :  { %v1127_v57 = vcombine.low %v1103_v47, %v1119_v49  ;;  %v1129_v58 = vcombine.low %v1110_v51, %v1126_v52  ;;  %v1128_v59 = vcombine.high %v1103_v47, %v1119_v49  ;;  %v1130_v62 = vcombine.high %v1110_v51, %v1126_v52 }
 0x504   :  { %v2845_v0 = vpack.c.bf16 %v1127_v57, %v1059_v53  ;;  %v2853_v1 = vpack.c.bf16 %v1129_v58, %v1061_v56  ;;  %v2857_v3 = vpack.c.bf16 %v1130_v62, %v1062_v30  ;;  %v2849_v55 = vpack.c.bf16 %v1128_v59, %v1060_v48 }
 0x506   :  { %2846 = vmatprep.subr.bf16.mxu1 %v2845_v0  ;;  %2854 = vmatprep.subr.bf16.mxu0 %v2853_v1 }
 0x507   :  { %2848 = vmatpush3.bf16.msra.mxu1 %v2845_v0  ;;  %2856 = vmatpush3.bf16.msra.mxu0 %v2853_v1 }
 0x508   :  { %2850 = vmatprep.subr.bf16.mxu1 %v2849_v55 }
 0x56c   :  { %v1562_v50 = vpop.xlane.xlu1 %1561 }
 0x56d   :  { %2932 = vrcp.f32 %v1562_v50 }
 0x570   :  { %v1559_v54 = vpop.xlane.xlu0 %1558  ;;  %v1568_v2 = vpop.xlane.xlu1 %1567 }
 0x571   :  { %2934 = vrcp.f32 %v1559_v54 }
 0x572   :  { %2936 = vrcp.f32 %v1568_v2 }
 0x574   :  { %v1565_v16 = vpop.xlane.xlu0 %1564 }
 0x575   :  { %2938 = vrcp.f32 %v1565_v16 }
 0x577   :  { %v2933_v17 = vpop.eup %2932 }
 0x578   :  { %v1571_v60 = vpop.xlane.xlu0 %1570  ;;  %v1590_v4 = vmul.f32 %v2933_v17, %v3424_v6 }
 0x579   :  { %2940 = vrcp.f32 %v1571_v60 }
 0x57a   :  { %v1580_v61 = vpop.xlane.xlu1 %1579 }
 0x57b   :  { %v2935_v10 = vpop.eup %2934  ;;  %2942 = vrcp.f32 %v1580_v61 }
 0x57c   :  { %v1577_v21 = vpop.xlane.xlu0 %1576  ;;  %v1589_v22 = vmul.f32 %v2935_v10, %v3430_v38  ;;  %v2937_v37 = vpop.eup %2936 }
 0x57d   :  { %2944 = vrcp.f32 %v1577_v21  ;;  %v1592_v11 = vmul.f32 %v2937_v37, %v3428_v33 }
 0x57e   :  { %2748 = vmatprep.mubr.msk.f32.mxu1 %vm1508_vm7, %v1589_v22 }
 0x57f   :  { %v2939_v7 = vpop.eup %2938  ;;  %2749 = vmatmul.mubr.msk.f32.vlgmr.msra.gmra.mrb[6].mxu1 %vm1508_vm7, %v1590_v4 }
 0x580   :  { %2852 = vmatpush3.bf16.msra.mxu1 %v2849_v55  ;;  %v1574_v8 = vpop.xlane.xlu0 %1573  ;;  %v1591_v9 = vmul.f32 %v2939_v7, %v3436_v19 }
 0x581   :  { %2858 = vmatprep.subr.bf16.mxu1 %v2857_v3  ;;  %2946 = vrcp.f32 %v1574_v8 }
 0x582   :  { %2755 = vmatprep.mubr.msk.f32.mxu1 %vm1508_vm7, %v1591_v9 }
 0x583   :  { %v2941_v38 = vpop.eup %2940  ;;  %2756 = vmatmul.mubr.msk.f32.vlgmr.msra.gmra.mrb[8].mxu1 %vm1508_vm7, %v1592_v11 }
 0x584   :  { %2860 = vmatpush3.bf16.msra.mxu1 %v2857_v3  ;;  %v1593_v6 = vmul.f32 %v2941_v38, %v3440_v25 }
 0x585   :  { %v2943_v34 = vpop.eup %2942 }
 0x586   :  { %2762 = vmatprep.mubr.msk.f32.mxu0 %vm1508_vm7, %v1593_v6  ;;  %v1596_v19 = vmul.f32 %v2943_v34, %v3446_v31 }
 0x587   :  { %v2945_v12 = vpop.eup %2944 }
 0x588   :  { %v1595_v13 = vmul.f32 %v2945_v12, %v3442_v28 }
 0x58a   :  { %2769 = vmatprep.mubr.msk.f32.mxu1 %vm1508_vm7, %v1595_v13 }
 0x58b   :  { %v2947_v33 = vpop.eup %2946  ;;  %2770 = vmatmul.mubr.msk.f32.vlgmr.msra.gmra.mrb[10].mxu1 %vm1508_vm7, %v1596_v19 }
 0x58c   :  { %v1594_v14 = vmul.f32 %v2947_v33, %v3456_v45 }
 0x58e   :  { %2763 = vmatmul.mubr.msk.f32.vlgmr.msra.gmra.mrb[4].mxu0 %vm1508_vm7, %v1594_v14 }
 0x652   :  { %v2750_v15 = vpop.f32.mrb[6].mxu1 }
 0x653   :  { %v1669_v18 = vpop.f32.mrb[7].mxu1 }
 0x656   :  { %v2757_v25 = vpop.f32.mrb[8].mxu1 }
 0x657   :  { %v1750_v20 = vpop.f32.mrb[9].mxu1 }
 0x65e   :  { %v2771_v23 = vpop.f32.mrb[10].mxu1 }
 0x65f   :  { %v2005_v24 = vcombine.low %v2757_v25, %v2771_v23  ;;  %v2006_v26 = vcombine.high %v2757_v25, %v2771_v23  ;;  %v1912_v27 = vpop.f32.mrb[11].mxu1 }
 0x660   :  { %v1937_v28 = vcombine.low %v1750_v20, %v1912_v27  ;;  %v1938_v29 = vcombine.high %v1750_v20, %v1912_v27 }
 0x661   :  { %v2764_v31 = vpop.f32.mrb[4].mxu0  ;;  %v2013_v45 = vrot.slane %v2005_v24, %v3254_v63  ;;  %v2020_v40 = vrot.slane %v2006_v26, %v3254_v63 }
 0x662   :  { %v1989_v30 = vcombine.low %v2750_v15, %v2764_v31  ;;  %v1990_v32 = vcombine.high %v2750_v15, %v2764_v31  ;;  %v1831_v35 = vpop.f32.mrb[5].mxu0  ;;  %v1945_v43 = vrot.slane %v1937_v28, %v3254_v63  ;;  %v1952_v44 = vrot.slane %v1938_v29, %v3254_v63  ;;  %v2225_v31 = vld [vmem:[%s3647_s7 + $0x8] sm:$0xff] }
 0x663   :  { %v1921_v36 = vcombine.low %v1669_v18, %v1831_v35  ;;  %v1922_v39 = vcombine.high %v1669_v18, %v1831_v35 }
 0x664   :  { %v1997_v41 = vrot.slane %v1989_v30, %v3254_v63  ;;  %v2004_v42 = vrot.slane %v1990_v32, %v3254_v63  ;;  %v2226_v30 = vld [vmem:[%s3647_s7 + $0x10] sm:$0xff]  ;;  %v2227_v32 = vld [vmem:[%s3647_s7 + $0x18] sm:$0xff] }
 0x665   :  { %v1929_v46 = vrot.slane %v1921_v36, %v3254_v63  ;;  %v1936_v47 = vrot.slane %v1922_v39, %v3254_v63 }
 0x666   :  { %v2021_v49 = vcombine.low %v1997_v41, %v2013_v45  ;;  %v2022_v51 = vcombine.high %v1997_v41, %v2013_v45  ;;  %v2037_v52 = vcombine.low %v2004_v42, %v2020_v40  ;;  %v2038_v53 = vcombine.high %v2004_v42, %v2020_v40 }
 0x667   :  { %v1953_v56 = vcombine.low %v1929_v46, %v1945_v43  ;;  %v1954_v57 = vcombine.high %v1929_v46, %v1945_v43  ;;  %v1969_v58 = vcombine.low %v1936_v47, %v1952_v44  ;;  %v1970_v59 = vcombine.high %v1936_v47, %v1952_v44 }
 0x668   :  { %v2029_v62 = vrot.slane %v2021_v49, %v3268_v5  ;;  %v2036_v0 = vrot.slane %v2022_v51, %v3268_v5  ;;  %v2045_v1 = vrot.slane %v2037_v52, %v3268_v5  ;;  %v2052_v48 = vrot.slane %v2038_v53, %v3268_v5 }
 0x669   :  { %v1961_v3 = vrot.slane %v1953_v56, %v3268_v5  ;;  %v1968_v55 = vrot.slane %v1954_v57, %v3268_v5  ;;  %v1977_v50 = vrot.slane %v1969_v58, %v3268_v5  ;;  %v1984_v54 = vrot.slane %v1970_v59, %v3268_v5 }
 0x66a   :  { %v2125_v2 = vcombine.low %v2029_v62, %v2036_v0  ;;  %v2632_v16 = vcombine.high %v2029_v62, %v2036_v0  ;;  %v2141_v60 = vcombine.low %v2045_v1, %v2052_v48  ;;  %v2633_v17 = vcombine.high %v2045_v1, %v2052_v48  ;;  %v2634_v1 = vld [vmem:[%s3648_s8] ss:$0 sm:$0xff] }
 0x66b   :  { %v2057_v61 = vcombine.low %v1961_v3, %v1968_v55  ;;  %v2630_v10 = vcombine.high %v1961_v3, %v1968_v55  ;;  %v2073_v21 = vcombine.low %v1977_v50, %v1984_v54  ;;  %v2631_v22 = vcombine.high %v1977_v50, %v1984_v54  ;;  %v2956_v54 = vld [vmem:[#allocation2 + $0x8] sm:$0xff] }
 0x66c   :  { %v2132_v4 = vrot.slane %v2125_v2, %v3254_v63  ;;  %v2140_v37 = vrot.slane %v2632_v16, %v3254_v63  ;;  %v2148_v7 = vrot.slane %v2141_v60, %v3254_v63  ;;  %v2156_v8 = vrot.slane %v2633_v17, %v3254_v63  ;;  %v2957_v16 = vld [vmem:[#allocation2] sm:$0xff] }
 0x66d   :  { %v2064_v9 = vrot.slane %v2057_v61, %v3254_v63  ;;  %v2072_v11 = vrot.slane %v2630_v10, %v3254_v63  ;;  %v2080_v38 = vrot.slane %v2073_v21, %v3254_v63  ;;  %v2088_v6 = vrot.slane %v2631_v22, %v3254_v63  ;;  %v2224_v63 = vld [vmem:[%s3647_s7] sm:$0xff]  ;;  %s3065_s7 = smov 24  }
 0x66e   :  { %v2157_v34 = vcombine.low %v2132_v4, %v2140_v37  ;;  %v2173_v12 = vcombine.low %v2148_v7, %v2156_v8  ;;  %v2158_v13 = vcombine.high %v2132_v4, %v2140_v37  ;;  %v2174_v19 = vcombine.high %v2148_v7, %v2156_v8 }
 0x66f   :  { %v2089_v33 = vcombine.low %v2064_v9, %v2072_v11  ;;  %v2105_v14 = vcombine.low %v2080_v38, %v2088_v6  ;;  %v2090_v15 = vcombine.high %v2064_v9, %v2072_v11  ;;  %v2106_v18 = vcombine.high %v2080_v38, %v2088_v6  ;;  %v2376_v6 = vld [vmem:[%s3651_s11] sm:$0xff] }
 0x670   :  { %v2165_v25 = vrot.slane %v2157_v34, %v3268_v5  ;;  %v2181_v20 = vrot.slane %v2173_v12, %v3268_v5  ;;  %v2172_v23 = vrot.slane %v2158_v13, %v3268_v5  ;;  %v2188_v24 = vrot.slane %v2174_v19, %v3268_v5  ;;  %v2377_v34 = vld [vmem:[%s3651_s11 + $0x8] sm:$0xff]  ;;  %v2378_v12 = vld [vmem:[%s3651_s11 + $0x10] sm:$0xff]  ;;  %v2379_v19 = vld [vmem:[%s3651_s11 + $0x18] sm:$0xff] }
 0x671   :  { %v2097_v26 = vrot.slane %v2089_v33, %v3268_v5  ;;  %v2113_v27 = vrot.slane %v2105_v14, %v3268_v5  ;;  %v2104_v28 = vrot.slane %v2090_v15, %v3268_v5  ;;  %v2120_v29 = vrot.slane %v2106_v18, %v3268_v5  ;;  %v2470_v14 = vld [vmem:[%s3653_s13] sm:$0xff]  ;;  %v2471_v15 = vld [vmem:[%s3653_s13 + $0x8] sm:$0xff]  ;;  %v2472_v18 = vld [vmem:[%s3653_s13 + $0x10] sm:$0xff] }
 0x672   :  { %v2190_v35 = vcombine.high %v2165_v25, %v2181_v20  ;;  %v2189_v36 = vcombine.low %v2165_v25, %v2181_v20  ;;  %v2191_v39 = vcombine.low %v2172_v23, %v2188_v24  ;;  %v2192_v45 = vcombine.high %v2172_v23, %v2188_v24  ;;  %v2473_v20 = vld [vmem:[%s3653_s13 + $0x18] sm:$0xff]  ;;  %v2474_v24 = vld [vmem:[%s3653_s13 + $0x20] sm:$0xff] }
 0x673   :  { %v2122_v40 = vcombine.high %v2097_v26, %v2113_v27  ;;  %v2121_v41 = vcombine.low %v2097_v26, %v2113_v27  ;;  %v2124_v42 = vcombine.high %v2104_v28, %v2120_v29  ;;  %v2123_v5 = vcombine.low %v2104_v28, %v2120_v29 }
 0x674   :  { %2197 = vrot.lane.b32.xlu1 %v2190_v35, %s3055_s16  ;;  %v2861_v43 = vpack.c.bf16 %v2225_v31, %v2224_v63  ;;  %v2865_v44 = vpack.c.bf16 %v2227_v32, %v2226_v30  ;;  %v2869_v13 = vpack.c.bf16 %v2377_v34, %v2376_v6  ;;  %v2873_v33 = vpack.c.bf16 %v2379_v19, %v2378_v12  ;;  %v2475_v63 = vld [vmem:[%s3653_s13 + $0x28] sm:$0xff] }
 0x675   :  { %2195 = vrot.lane.b32.xlu0 %v2122_v40, %s3055_s16  ;;  %v2877_v25 = vpack.c.bf16 %v2471_v15, %v2470_v14  ;;  %v2881_v23 = vpack.c.bf16 %v2473_v20, %v2472_v18  ;;  %v2885_v26 = vpack.c.bf16 %v2475_v63, %v2474_v24 }
 0x676   :  { %2862 = vmatprep.subr.bf16.mxu0 %v2861_v43  ;;  %2870 = vmatprep.subr.bf16.mxu1 %v2869_v13 }
 0x677   :  { %2864 = vmatpush3.bf16.msra.mxu0 %v2861_v43  ;;  %2872 = vmatpush3.bf16.msra.mxu1 %v2869_v13 }
 0x678   :  { %2205 = vrot.lane.b32.xlu1 %v2191_v39, %s3064_s20  ;;  %2866 = vmatprep.subr.bf16.mxu0 %v2865_v44 }
 0x679   :  { %2211 = vrot.lane.b32.xlu0 %v2124_v42, %s3065_s7  ;;  %2874 = vmatprep.subr.bf16.mxu1 %v2873_v33 }
 0x67b   :  { %2868 = vmatpush3.bf16.msra.mxu0 %v2865_v44  ;;  %2876 = vmatpush3.bf16.msra.mxu1 %v2873_v33 }
 0x67c   :  { %2203 = vrot.lane.b32.xlu1 %v2123_v5, %s3064_s20  ;;  %2878 = vmatprep.subr.bf16.mxu0 %v2877_v25 }
 0x680   :  { %2213 = vrot.lane.b32.xlu1 %v2192_v45, %s3065_s7 }
 0x6e6   :  { %v2198_v46 = vpop.permute.xlu1 %2197 }
 0x6e7   :  { %v2196_v47 = vpop.permute.xlu0 %2195  ;;  %v2218_v58 = vsel %vm1131_vm5, %v2189_v36, %v2198_v46  ;;  %v2637_v46 = vld [vmem:[%s3649_s9] ss:$0 sm:$0xff] }
 0x6e8   :  { %v2217_v51 = vsel %vm1131_vm5, %v2121_v41, %v2196_v47 }
 0x6ea   :  { %v2206_v49 = vpop.permute.xlu1 %2205 }
 0x6eb   :  { %v2212_v53 = vpop.permute.xlu0 %2211  ;;  %v2220_v59 = vsel %vm1508_vm7, %v2218_v58, %v2206_v49 }
 0x6ee   :  { %v2204_v52 = vpop.permute.xlu1 %2203 }
 0x6ef   :  { %v2219_v56 = vsel %vm1508_vm7, %v2217_v51, %v2204_v52  ;;  %v2638_v51 = vld [vmem:[%s3650_s10] ss:$0 sm:$0xff] }
 0x6f0   :  { %v2222_v57 = vsel %vm2221_vm8, %v2219_v56, %v2212_v53 }
 0x6f1   :  { %2780 = vmatprep.mubr.msk.f32.mxu0 %vm96_vm0, %v2222_v57 }
 0x6f2   :  { %v2214_v62 = vpop.permute.xlu1 %2213 }
 0x6f3   :  { %v2223_v0 = vsel %vm2221_vm8, %v2220_v59, %v2214_v62  ;;  %v2476_v62 = vld [vmem:[%s3653_s13 + $0x30] sm:$0xff] }
 0x6f4   :  { %2781 = vmatmul.mubr.msk.f32.vlgmr.msra.gmra.mrb[6].mxu0 %vm96_vm0, %v2223_v0  ;;  %v2477_v0 = vld [vmem:[%s3653_s13 + $0x38] sm:$0xff]  ;;  %s3066_s13 = smov [#allocation8]  }
 0x6f5   :  { %2880 = vmatpush3.bf16.msra.mxu0 %v2877_v25  ;;  %s2576_s27 = sshll.u32 %s3066_s13, 4  ;;  %s2577_s27 = int_to_ptr.vmem [resolvable:$true] %s2576_s27 }
 0x6f6   :  { %2882 = vmatprep.subr.bf16.mxu0 %v2881_v23  ;;  %p3029_p11 = scmp.lt.s32.totalorder %s2577_s27, %s2577_s27 }
 0x6f9   :  { %2884 = vmatpush3.bf16.msra.mxu0 %v2881_v23 }
 0x6fa   :  { %2886 = vmatprep.subr.bf16.mxu0 %v2885_v26 }
 0x6fd   :  { %2888 = vmatpush3.bf16.msra.mxu0 %v2885_v26 }
 0x7c7   :  { %v2782_v48 = vpop.f32.mrb[6].mxu0 }
 0x7c8   :  { %v2313_v3 = vadd.f32 %v2782_v48, %v2634_v1  ;;  %v2307_v55 = vpop.f32.mrb[7].mxu0  ;;  %v2639_v48 = vld [vmem:[%s3652_s12] ss:$0 sm:$0xff]  ;;  %s3024_s12 = scalar_lea.vmem %s2577_s27, 256 }
 0x7c9   :  { %v2308_v50 = vadd.f32 %v2634_v1, %v2307_v55  ;;  %v2889_v1 = vpack.c.bf16 %v2477_v0, %v2476_v62  ;;  %p3025_p10 = scmp.ne.s32.totalorder %s2577_s27, %s3024_s12  ;;  %p3030_p12 = scmp.lt.s32.totalorder %s3024_s12, %s3024_s12 }
 0x7ca   :  { %v3559_v2 = vadd.f32 %v2956_v54, %v2313_v3 }
 0x7cb   :  { %v3561_v60 = vadd.f32 %v2957_v16, %v2308_v50  ;;  %2890 = vmatprep.subr.bf16.mxu0 %v2889_v1  ;;  %p3031_p13 = por %p3030_p12, %p3029_p11 }
 0x7cc   :  { %v2323_v17 = vsel %vm96_vm0, %v3559_v2, 0.0  ;;  %2892 = vmatpush3.bf16.msra.mxu0 %v2889_v1 }
 0x7cd   :  { %2324 = vadd.xlane.f32.xlu1 %v2323_v17  ;;  %v2320_v61 = vsel %vm96_vm0, %v3561_v60, 0.0  ;;  %p3032_p0 = pnand %p3031_p13, %p3025_p10 }
 0x7ce   :  { %2321 = vadd.xlane.f32.xlu0 %v2320_v61  ;;  %v2642_v61 = vld [vmem:[%s3654_s14] ss:$0 sm:$0xff] }
 0x85a   :  { %v2325_v10 = vpop.xlane.xlu1 %2324 }
 0x85b   :  { %v2327_v21 = vmul.f32 0.03125, %v2325_v10  ;;  %v2322_v22 = vpop.xlane.xlu0 %2321 }
 0x85c   :  { %v2326_v4 = vmul.f32 0.03125, %v2322_v22 }
 0x85d   :  { %v2329_v37 = vsub.f32 %v3559_v2, %v2327_v21 }
 0x85e   :  { %v2328_v7 = vsub.f32 %v3561_v60, %v2326_v4 }
 0x85f   :  { %v2331_v11 = vmul.f32 %v2329_v37, %v2329_v37  ;;  %v2347_v53 = vmul.f32 %v2637_v46, %v2329_v37 }
 0x860   :  { %v2330_v8 = vmul.f32 %v2328_v7, %v2328_v7  ;;  %v2346_v47 = vmul.f32 %v2637_v46, %v2328_v7 }
 0x861   :  { %v2335_v38 = vsel %vm96_vm0, %v2331_v11, 0.0 }
 0x862   :  { %v2332_v9 = vsel %vm96_vm0, %v2330_v8, 0.0 }
 0x863   :  { %2333 = vadd.xlane.f32.xlu0 %v2332_v9 }
 0x867   :  { %2336 = vadd.xlane.f32.xlu0 %v2335_v38 }
 0x8f0   :  { %v2334_v27 = vpop.xlane.xlu0 %2333 }
 0x8f1   :  { %v2338_v28 = vmul.f32 0.032258064, %v2334_v27 }
 0x8f3   :  { %2948 = vrsqrt.f32 %v2338_v28  ;;  %vm2350_vm9 = vcmp.eq.f32.partialorder %v2338_v28, inf  ;;  %v2353_v35 = vand.u32 2147483648, %v2338_v28  ;;  %vm2352_vm10 = vcmp.eq.f32.partialorder %v2338_v28, 0.0 }
 0x8f4   :  { %v2337_v29 = vpop.xlane.xlu0 %2336 }
 0x8f5   :  { %v2339_v31 = vmul.f32 0.032258064, %v2337_v29 }
 0x8f7   :  { %2950 = vrsqrt.f32 %v2339_v31  ;;  %vm2357_vm11 = vcmp.eq.f32.partialorder %v2339_v31, inf  ;;  %v2360_v42 = vand.u32 2147483648, %v2339_v31  ;;  %vm2359_vm12 = vcmp.eq.f32.partialorder %v2339_v31, 0.0 }
 0x8fd   :  { %v2949_v30 = vpop.eup %2948 }
 0x8fe   :  { %v2349_v32 = vmul.f32 %v2949_v30, %v2338_v28 }
 0x900   :  { %v2351_v36 = vsel %vm2350_vm9, %v2338_v28, %v2349_v32 }
 0x901   :  { %v2951_v39 = vpop.eup %2950  ;;  %v2354_v45 = vsel %vm2352_vm10, %v2353_v35, %v2351_v36 }
 0x902   :  { %v2356_v40 = vmul.f32 %v2951_v39, %v2339_v31  ;;  %v2362_v41 = vadd.f32 1e-06, %v2354_v45 }
 0x904   :  { %v2358_v5 = vsel %vm2357_vm11, %v2339_v31, %v2356_v40  ;;  %2952 = vrcp.f32 %v2362_v41 }
 0x905   :  { %v2361_v43 = vsel %vm2359_vm12, %v2360_v42, %v2358_v5 }
 0x906   :  { %v2363_v44 = vadd.f32 1e-06, %v2361_v43 }
 0x908   :  { %2954 = vrcp.f32 %v2363_v44 }
 0x90e   :  { %v2953_v49 = vpop.eup %2952 }
 0x90f   :  { %v2365_v52 = vmul.f32 %v2953_v49, %v2346_v47 }
 0x911   :  { %v2374_v56 = vadd.f32 %v2638_v51, %v2365_v52 }
 0x912   :  { %v2955_v57 = vpop.eup %2954 }
 0x913   :  { %v2367_v58 = vmul.f32 %v2955_v57, %v2347_v53  ;;  %2791 = vmatprep.mubr.msk.f32.mxu1 %vm96_vm0, %v2374_v56 }
 0x915   :  { %v2375_v59 = vadd.f32 %v2638_v51, %v2367_v58 }
 0x917   :  { %2792 = vmatmul.mubr.msk.f32.vlgmr.msra.gmra.mrb[12].mxu1 %vm96_vm0, %v2375_v59 }
 0x9ea   :  { %v2793_v3 = vpop.f32.mrb[12].mxu1 }
 0x9eb   :  { %v2465_v55 = vadd.f32 %v2793_v3, %v2639_v48  ;;  %v2459_v50 = vpop.f32.mrb[13].mxu1 }
 0x9ec   :  { %v2460_v54 = vadd.f32 %v2639_v48, %v2459_v50 }
 0x9ed   :  { %v2469_v17 = vmax.f32 %v2465_v55, 0.0 }
 0x9ee   :  { %v2468_v16 = vmax.f32 %v2460_v54, 0.0 }
 0x9f0   :  { %2810 = vmatprep.mubr.msk.f32.mxu0 %vm2485_vm13, %v2468_v16 }
 0x9f1   :  { %2811 = vmatmul.mubr.msk.f32.vlgmr.msra.gmra.mrb[8].mxu0 %vm2485_vm13, %v2469_v17 }
 0xac4   :  { %v2812_v10 = vpop.f32.mrb[8].mxu0 }
 0xac5   :  { %v2564_v21 = vadd.f32 %v2812_v10, %v2642_v61  ;;  %v2558_v22 = vpop.f32.mrb[9].mxu0 }
 0xac6   :  { %v2559_v4 = vadd.f32 %v2642_v61, %v2558_v22 }
 0xac7   :  { %v2568_v37 = vadd.f32 %v2564_v21, %v3559_v2 }
 0xac8   :  { %v2567_v7 = vadd.f32 %v2559_v4, %v3561_v60 }
 0xac9   :  { %2570 = vst.msk [vmem:[#allocation8 + $0x8] sm:$0xff] %vm96_vm0, %v2568_v37 }
 0xaca   :  { %2569 = vst.msk [vmem:[#allocation8] sm:$0xff] %vm96_vm0, %v2567_v7 }
 0xacb   :  { %3035 = shalt.err (!%p3032_p0)
}
 0xacc   :  { %s3036_s0 = scalar_lea.hbm %s3655_s15, 256 }
 0xacd   :  { %p3037_p1 = scmp.ne.s32.totalorder %s3655_s15, %s3036_s0  ;;  %p3040_p2 = scmp.lt.u32.totalorder %s3036_s0, %s3655_s15 }
 0xacf   :  { %p3042_p3 = pnand %p3040_p2, %p3037_p1 }
 0xad1   :  { %3045 = shalt.err (!%p3042_p3)
}
 0xad2   :  { %2582 = dma.vmem_to_hbm [thread:$0]  %s2577_s27, 256, %s3655_s15, [#allocation4], %s3054_s30, %s3054_s30, %s3055_s16  }
 0xad3   :  { %3050 = dma.done.wait [#allocation4], 256  }
 0xad4   :  { %3051 = vsyncadd [#allocation4], 4294967040 }
 0xad5   :  { %2586 = vsyncpa [#allocation3], 1 }
 0xad6   :  { %2587 = vsyncpa [#allocation6], 1 }
 0xad7   :  { %2588 = vsyncpa [#allocation4], 1 }

</bundles_post_ra>
